<compile_context>
chip_gen: v6e
topology: v6e:2x2x1
jax: 0.10.0
libtpu: 0.0.40
codegen_flags: <defaults>
</compile_context>

<pallas_src>
import jax
import jax.numpy as jnp
from jax.experimental import pallas as pl
from jax.experimental.pallas import tpu as pltpu


def subpixel_block(x_nchw, w_hwio, b, alpha, k, scale):
    """SubPixelBlock forward. x_nchw: (N, C, H, W); w_hwio: (k, k, C, C*scale^2)."""
    N, C, H, W = x_nchw.shape
    Cout = C * scale * scale
    P = k // 2
    Hp, Wp = H + 2 * P, W + 2 * P
    KKC = k * k * C
    HW = H * W

    # ---- wrapper-side glue (pure layout, hoisted out of the kernel) ----
    x = jnp.transpose(x_nchw, (0, 2, 3, 1))                 # NHWC
    xp = jnp.pad(x, ((0, 0), (P, P), (P, P), (0, 0)))       # zero 'same' padding
    w_t = jnp.transpose(w_hwio.reshape(KKC, Cout))          # (Cout, K*K*C)
    b_col = b.reshape(Cout, 1).astype(jnp.float32)          # (Cout, 1)
    a_sm = jnp.reshape(alpha, (1,)).astype(jnp.float32)     # PReLU slope -> SMEM

    def kernel(x_ref, wt_ref, b_ref, a_ref, out_ref):
        # x_ref  : (1, Hp, Wp, C)  padded NHWC tile for one batch element
        # wt_ref : (Cout, K*K*C)   conv weight, im2col-transposed
        # b_ref  : (Cout, 1)       bias column (broadcasts along lanes)
        # a_ref  : (1,) in SMEM    PReLU slope (single shared parameter)
        # out_ref: (1, Cout, H*W)  lane-dense conv+bias+PReLU output
        taps = []
        for kh in range(k):
            for kw in range(k):
                taps.append(
                    x_ref[0, kh:kh + H, kw:kw + W, :].reshape(HW, C))
        cols = jnp.concatenate(taps, axis=1)                # (H*W, K*K*C) im2col
        # Single MXU matmul, contracting the K*K*C axis of both operands;
        # result is produced directly in (Cout, H*W) so stores are lane dense.
        acc = jax.lax.dot_general(
            wt_ref[...], cols,
            dimension_numbers=(((1,), (1,)), ((), ())),
            preferred_element_type=jnp.float32)             # (Cout, H*W) f32
        acc = acc + b_ref[...]                              # bias
        a = a_ref[0]
        acc = jnp.where(acc >= 0.0, acc, acc * a)           # PReLU (shared slope)
        out_ref[0] = acc.astype(out_ref.dtype)

    conv = pl.pallas_call(
        kernel,
        out_shape=jax.ShapeDtypeStruct((N, Cout, HW), x.dtype),
        grid_spec=pltpu.PrefetchScalarGridSpec(
            num_scalar_prefetch=0,
            grid=(N,),
            in_specs=[
                pl.BlockSpec((1, Hp, Wp, C), lambda i: (i, 0, 0, 0)),
                pl.BlockSpec((Cout, KKC), lambda i: (0, 0)),
                pl.BlockSpec((Cout, 1), lambda i: (0, 0)),
                pl.BlockSpec(memory_space=pltpu.MemorySpace.SMEM),
            ],
            out_specs=pl.BlockSpec((1, Cout, HW), lambda i: (i, 0, 0)),
        ),
        compiler_params=pltpu.CompilerParams(
            dimension_semantics=("parallel",)),
    )(xp, w_t, b_col, a_sm)                                 # (N, Cout, H*W)

    # ---- PixelShuffle: pure permutation, done in the wrapper ----
    # conv channel index = c*scale^2 + i*scale + j  ->  out[n, c, h*s+i, w*s+j]
    y = conv.reshape(N, C, scale, scale, H, W)
    y = jnp.transpose(y, (0, 1, 4, 2, 5, 3))
    return y.reshape(N, C, H * scale, W * scale)


def _ref_forward(x_nchw, w_hwio, b, alpha, scale):
    """Pure-JAX reference of SubPixelBlock.forward."""
    dn = ('NHWC', 'HWIO', 'NHWC')
    x = jnp.transpose(x_nchw, (0, 2, 3, 1))
    y = jax.lax.conv_general_dilated(
        x, w_hwio, (1, 1), 'SAME', dimension_numbers=dn,
        precision=jax.lax.Precision.HIGHEST) + b.reshape(1, 1, 1, -1)
    y = jnp.transpose(y, (0, 3, 1, 2))                      # (N, Cout, H, W)
    N, Cout, H, W = y.shape
    C = Cout // (scale * scale)
    y = y.reshape(N, C, scale, scale, H, W)
    y = jnp.transpose(y, (0, 1, 4, 2, 5, 3)).reshape(N, C, H * scale, W * scale)
    return jnp.where(y >= 0.0, y, alpha * y)                # PReLU


if __name__ == "__main__":
    N, C, H, W, K, SCALE = 2, 4, 16, 16, 3, 4
    Cout = C * SCALE * SCALE                                # 64

    key = jax.random.PRNGKey(0)
    k1, k2, k3 = jax.random.split(key, 3)
    fan_in = C * K * K
    bound = 1.0 / (fan_in ** 0.5)
    # Deterministic synthetic params (Conv2d-style uniform init), HWIO layout.
    w = jax.random.uniform(k1, (K, K, C, Cout), jnp.float32, -bound, bound)
    b = jax.random.uniform(k2, (Cout,), jnp.float32, -bound, bound)
    alpha = jnp.float32(0.25)   # PyTorch nn.PReLU() default single parameter

    x = jax.random.normal(k3, (N, C, H, W), jnp.float32)

    y = subpixel_block(x, w, b, alpha, K, SCALE)
    y = jax.block_until_ready(y)

    y_ref = _ref_forward(x, w, b, alpha, SCALE)
    assert y.shape == (N, C, H * SCALE, W * SCALE)
    assert jnp.allclose(y, y_ref, atol=1e-4, rtol=1e-4), "mismatch vs reference"

    print("KERNEL_OK")
</pallas_src>

<mosaic_0001>
module attributes {stable_mosaic.version = 11 : i64} {
  func.func @kernel(%arg0: i32, %arg1: memref<1x18x18x4xf32, #tpu.memory_space<vmem>>, %arg2: memref<64x36xf32, #tpu.memory_space<vmem>>, %arg3: memref<64x1xf32, #tpu.memory_space<vmem>>, %arg4: memref<1xf32, #tpu.memory_space<smem>>, %arg5: memref<1x64x256xf32, #tpu.memory_space<vmem>>) attributes {dimension_semantics = [#tpu.dimension_semantics<parallel>], iteration_bounds = array<i64: 2>, scalar_prefetch = 0 : i64, scratch_operands = 0 : i64, tpu.core_type = #tpu.core_type<tc>, window_params = [{transform_indices = @transform_0, window_bounds = array<i64: 1, 18, 18, 4>}, {pipeline_mode = #tpu.pipeline_mode<synchronous>, transform_indices = @transform_1, window_bounds = array<i64: 64, 36>}, {pipeline_mode = #tpu.pipeline_mode<synchronous>, transform_indices = @transform_2, window_bounds = array<i64: 64, 1>}, {transform_indices = @transform_3, window_bounds = array<i64: 1>}, {transform_indices = @transform_4, window_bounds = array<i64: 1, 64, 256>}]} {
    %c0 = arith.constant 0 : index
    %c0_0 = arith.constant 0 : index
    %c0_1 = arith.constant 0 : index
    %c0_2 = arith.constant 0 : index
    %0 = vector.load %arg1[%c0, %c0_0, %c0_1, %c0_2] : memref<1x18x18x4xf32, #tpu.memory_space<vmem>>, vector<1x16x16x4xf32>
    %1 = vector.shape_cast %0 : vector<1x16x16x4xf32> to vector<16x16x4xf32>
    %2 = vector.shape_cast %1 : vector<16x16x4xf32> to vector<256x4xf32>
    %c0_3 = arith.constant 0 : index
    %c0_4 = arith.constant 0 : index
    %c1 = arith.constant 1 : index
    %c0_5 = arith.constant 0 : index
    %3 = vector.load %arg1[%c0_3, %c0_4, %c1, %c0_5] : memref<1x18x18x4xf32, #tpu.memory_space<vmem>>, vector<1x16x16x4xf32>
    %4 = vector.shape_cast %3 : vector<1x16x16x4xf32> to vector<16x16x4xf32>
    %5 = vector.shape_cast %4 : vector<16x16x4xf32> to vector<256x4xf32>
    %c0_6 = arith.constant 0 : index
    %c0_7 = arith.constant 0 : index
    %c2 = arith.constant 2 : index
    %c0_8 = arith.constant 0 : index
    %6 = vector.load %arg1[%c0_6, %c0_7, %c2, %c0_8] : memref<1x18x18x4xf32, #tpu.memory_space<vmem>>, vector<1x16x16x4xf32>
    %7 = vector.shape_cast %6 : vector<1x16x16x4xf32> to vector<16x16x4xf32>
    %8 = vector.shape_cast %7 : vector<16x16x4xf32> to vector<256x4xf32>
    %c0_9 = arith.constant 0 : index
    %c1_10 = arith.constant 1 : index
    %c0_11 = arith.constant 0 : index
    %c0_12 = arith.constant 0 : index
    %9 = vector.load %arg1[%c0_9, %c1_10, %c0_11, %c0_12] : memref<1x18x18x4xf32, #tpu.memory_space<vmem>>, vector<1x16x16x4xf32>
    %10 = vector.shape_cast %9 : vector<1x16x16x4xf32> to vector<16x16x4xf32>
    %11 = vector.shape_cast %10 : vector<16x16x4xf32> to vector<256x4xf32>
    %c0_13 = arith.constant 0 : index
    %c1_14 = arith.constant 1 : index
    %c1_15 = arith.constant 1 : index
    %c0_16 = arith.constant 0 : index
    %12 = vector.load %arg1[%c0_13, %c1_14, %c1_15, %c0_16] : memref<1x18x18x4xf32, #tpu.memory_space<vmem>>, vector<1x16x16x4xf32>
    %13 = vector.shape_cast %12 : vector<1x16x16x4xf32> to vector<16x16x4xf32>
    %14 = vector.shape_cast %13 : vector<16x16x4xf32> to vector<256x4xf32>
    %c0_17 = arith.constant 0 : index
    %c1_18 = arith.constant 1 : index
    %c2_19 = arith.constant 2 : index
    %c0_20 = arith.constant 0 : index
    %15 = vector.load %arg1[%c0_17, %c1_18, %c2_19, %c0_20] : memref<1x18x18x4xf32, #tpu.memory_space<vmem>>, vector<1x16x16x4xf32>
    %16 = vector.shape_cast %15 : vector<1x16x16x4xf32> to vector<16x16x4xf32>
    %17 = vector.shape_cast %16 : vector<16x16x4xf32> to vector<256x4xf32>
    %c0_21 = arith.constant 0 : index
    %c2_22 = arith.constant 2 : index
    %c0_23 = arith.constant 0 : index
    %c0_24 = arith.constant 0 : index
    %18 = vector.load %arg1[%c0_21, %c2_22, %c0_23, %c0_24] : memref<1x18x18x4xf32, #tpu.memory_space<vmem>>, vector<1x16x16x4xf32>
    %19 = vector.shape_cast %18 : vector<1x16x16x4xf32> to vector<16x16x4xf32>
    %20 = vector.shape_cast %19 : vector<16x16x4xf32> to vector<256x4xf32>
    %c0_25 = arith.constant 0 : index
    %c2_26 = arith.constant 2 : index
    %c1_27 = arith.constant 1 : index
    %c0_28 = arith.constant 0 : index
    %21 = vector.load %arg1[%c0_25, %c2_26, %c1_27, %c0_28] : memref<1x18x18x4xf32, #tpu.memory_space<vmem>>, vector<1x16x16x4xf32>
    %22 = vector.shape_cast %21 : vector<1x16x16x4xf32> to vector<16x16x4xf32>
    %23 = vector.shape_cast %22 : vector<16x16x4xf32> to vector<256x4xf32>
    %c0_29 = arith.constant 0 : index
    %c2_30 = arith.constant 2 : index
    %c2_31 = arith.constant 2 : index
    %c0_32 = arith.constant 0 : index
    %24 = vector.load %arg1[%c0_29, %c2_30, %c2_31, %c0_32] : memref<1x18x18x4xf32, #tpu.memory_space<vmem>>, vector<1x16x16x4xf32>
    %25 = vector.shape_cast %24 : vector<1x16x16x4xf32> to vector<16x16x4xf32>
    %26 = vector.shape_cast %25 : vector<16x16x4xf32> to vector<256x4xf32>
    %27 = tpu.concatenate %2, %5, %8, %11, %14, %17, %20, %23, %26 in 1 : vector<256x4xf32>, vector<256x4xf32>, vector<256x4xf32>, vector<256x4xf32>, vector<256x4xf32>, vector<256x4xf32>, vector<256x4xf32>, vector<256x4xf32>, vector<256x4xf32> -> vector<256x36xf32>
    %c0_33 = arith.constant 0 : index
    %c0_34 = arith.constant 0 : index
    %28 = vector.load %arg2[%c0_33, %c0_34] : memref<64x36xf32, #tpu.memory_space<vmem>>, vector<64x36xf32>
    %cst = arith.constant dense<0.000000e+00> : vector<64x256xf32>
    %29 = tpu.matmul %28, %27, %cst {dimension_numbers = #tpu.dot_dimension_numbers<[1], [1], [0], [0], [0, 0, 1, 0], [], []>} : vector<64x36xf32>, vector<256x36xf32>, vector<64x256xf32> -> vector<64x256xf32>
    %c0_35 = arith.constant 0 : index
    %c0_36 = arith.constant 0 : index
    %30 = vector.load %arg3[%c0_35, %c0_36] : memref<64x1xf32, #tpu.memory_space<vmem>>, vector<64x1xf32>
    %31 = vector.broadcast %30 : vector<64x1xf32> to vector<64x256xf32>
    %32 = arith.addf %29, %31 : vector<64x256xf32>
    %c0_37 = arith.constant 0 : index
    %33 = memref.load %arg4[%c0_37] : memref<1xf32, #tpu.memory_space<smem>>
    %cst_38 = arith.constant 0.000000e+00 : f32
    %34 = vector.broadcast %cst_38 : f32 to vector<64x256xf32>
    %35 = arith.cmpf oge, %32, %34 : vector<64x256xf32>
    %36 = vector.broadcast %33 : f32 to vector<64x256xf32>
    %37 = arith.mulf %32, %36 : vector<64x256xf32>
    %38 = arith.select %35, %32, %37 : vector<64x256xi1>, vector<64x256xf32>
    %c0_39 = arith.constant 0 : index
    %c0_40 = arith.constant 0 : index
    %c0_41 = arith.constant 0 : index
    %39 = vector.load %arg5[%c0_39, %c0_40, %c0_41] : memref<1x64x256xf32, #tpu.memory_space<vmem>>, vector<1x64x256xf32>
    %40 = vector.shape_cast %39 : vector<1x64x256xf32> to vector<64x256xf32>
    %41 = vector.shape_cast %38 : vector<64x256xf32> to vector<1x64x256xf32>
    tpu.vector_store %arg5[%c0_39, %c0_40, %c0_41], %41 {strides = array<i32>} : memref<1x64x256xf32, #tpu.memory_space<vmem>>, vector<1x64x256xf32>,
    return
  }
  func.func @transform_0(%arg0: i32) -> (i32, i32, i32, i32) {
    %c0_i32 = arith.constant 0 : i32
    %c0_i32_0 = arith.constant 0 : i32
    %c0_i32_1 = arith.constant 0 : i32
    %c0_i32_2 = arith.constant 0 : i32
    return %arg0, %c0_i32, %c0_i32_0, %c0_i32_1 : i32, i32, i32, i32
  }
  func.func @transform_1(%arg0: i32) -> (i32, i32) {
    %c0_i32 = arith.constant 0 : i32
    %c0_i32_0 = arith.constant 0 : i32
    %c0_i32_1 = arith.constant 0 : i32
    return %c0_i32, %c0_i32_0 : i32, i32
  }
  func.func @transform_2(%arg0: i32) -> (i32, i32) {
    %c0_i32 = arith.constant 0 : i32
    %c0_i32_0 = arith.constant 0 : i32
    %c0_i32_1 = arith.constant 0 : i32
    return %c0_i32, %c0_i32_0 : i32, i32
  }
  func.func @transform_3(%arg0: i32) -> i32 {
    %c0_i32 = arith.constant 0 : i32
    %c0_i32_0 = arith.constant 0 : i32
    return %c0_i32 : i32
  }
  func.func @transform_4(%arg0: i32) -> (i32, i32, i32) {
    %c0_i32 = arith.constant 0 : i32
    %c0_i32_0 = arith.constant 0 : i32
    %c0_i32_1 = arith.constant 0 : i32
    return %arg0, %c0_i32, %c0_i32_0 : i32, i32, i32
  }
}

</mosaic_0001>

<bundles_post_ra>
// kernel: tpu_custom_call.1
= control target key start
LH: loop header
LB: loop body
LE: loop exit
PB: predicated region body
PF: predicated region fallthrough
CT: control target
= control target key end

     0   :  { %s4295_s0 = inlined_call_operand.vmem [shape: f32[2,18,18,4], index: 0, kind: input, shape index: {}]   ;;  %s4296_s1 = inlined_call_operand.vmem [shape: f32[64,36], index: 1, kind: input, shape index: {}]   ;;  %s4297_s2 = inlined_call_operand.vmem [shape: f32[64,1], index: 2, kind: input, shape index: {}]   ;;  %s4298_s3 = inlined_call_operand.<no memory space> [shape: f32[1], index: 3, kind: input, shape index: {}]   ;;  %s4299_s4 = inlined_call_operand.hbm [shape: f32[2,64,256], index: 4, kind: output, shape index: {}]  }
   0x1   :  { %9 = sst [smem:[#allocation2]] %s4298_s3 }
   0x2   :  { %10 = vsyncpa [#allocation4], 0 }
   0x3   :  { %12 = vsyncpa [#allocation4 + $0x1], 0  ;;  %s2684_s17 = smov 0   ;;  %s2686_s18 = smov 0  }
   0x4   :  { %s2688_s19 = smov 0   ;;  %s2690_s20 = smov 0  }
   0x5 LB: > { %s2705_s3 = sadd.s32 4294967295, %s2643_s20   ;;  %s2207_s21 = sadd.s32 4294967294, %s2643_s20   ;;  %s2643_s20 = sphi %s2690_s20, %s4389_s20   ;;  %s2639_s19 = sphi %s2688_s19, %s4388_s19   ;;  %s2635_s18 = sphi %s2686_s18, %s4387_s18   ;;  %s2631_s17 = sphi %s2684_s17, %s4386_s17  }
   0x6   : > { %s2709_s22 = sadd.s32 1, %s2643_s20   ;;  %s114_s23 = sadd.s32 1, %s2639_s19 }
   0x7   : > { %s111_s24 = ssub.s32 %s2643_s20, %s2709_s22  ;;  %p124_p0 = scmp.ne.s32.totalorder %s2639_s19, %s2635_s18 }
   0x8   : > { %p112_p1 = scmp.eq.s32.totalorder %s111_s24, 0  ;;  %p125_p2 = scmp.eq.s32.totalorder %s2705_s3, 1 }
   0x9   : > { %p130_p3 = scmp.ne.s32.totalorder %s2635_s18, %s2631_s17  ;;  %p131_p4 = scmp.eq.s32.totalorder %s2207_s21, 1 }
   0xa   : > { %s2720_s25 = scalar_select %p112_p1, %s2639_s19, %s114_s23  }
   0xb   : > { %p2722_p5 = por %p125_p2, %p124_p0  ;;  %p2726_p6 = por %p131_p4, %p130_p3 }
   0xc   : > { %p2210_p7 = scmp.ge.s32.totalorder %s2643_s20, 1  ;;  %p166_p8 = scmp.lt.s32.totalorder %s2643_s20, 3 }
   0xe   : > { %p167_p9 = pnand %p2210_p7, %p166_p8 }
  0x10   : > { %170 = sbr.rel (%p167_p9) target bundleno = 885 (0x375), region = 36 }
  0x15   : > { %p192_p10 = scmp.lt.s32.totalorder %s2705_s3, 1  ;;  %s2645_s7 = smov 4   ;;  %vm1511_vm0 = vcmask 31744   ;;  %vm1544_vm1 = vcmask 64512   ;;  %vm1577_vm2 = vcmask 97280   ;;  %vm1643_vm3 = vcmask 162816  }
  0x16   : > { %s2646_s8 = smov 8   ;;  %s2647_s9 = smov 12   ;;  %vm1610_vm4 = vcmask 130048   ;;  %vm1676_vm5 = vcmask 195584   ;;  %vm1709_vm6 = vcmask 228352   ;;  %vm1742_vm7 = vcmask 261120  }
  0x17   : > { %s193_s28 = scalar_select %p192_p10, %s2705_s3, 1  ;;  %vm1831_vm8 = vcmask 293888  }
  0x18   : > { %s2648_s10 = smov 16   ;;  %s2649_s11 = smov 20  }
  0x19   : > { %s2531_s29 = smul.u32 432, %s193_s28  ;;  %s2650_s12 = smov 24  }
  0x1a   : > { %s2651_s13 = smov 28   ;;  %s2652_s14 = smov 32  }
  0x1b   : > { %s2737_s6 = scalar_lea.vmem %s4295_s0, %s2531_s29  ;;  %s2450_s21 = sshll.u32 %s2705_s3, 11 }
  0x1c   : > { %v2740_v0 = vld [vmem:[%s2737_s6 + $0x19] sm:$0xff]  ;;  %v229_v1 = vld [vmem:[%s2737_s6 + $0x1] sm:$0xff]  ;;  %v230_v3 = vld [vmem:[%s2737_s6 + $0x9] sm:$0xff]  ;;  %s4246_s28 = scalar_lea.hbm %s4299_s4, %s2450_s21  ;;  %s2654_s5 = smov [#allocation3]  }
  0x1d   : > { %523 = vrot.lane.b32.xlu1 %v2740_v0, %s2645_s7  ;;  %519 = vrot.lane.b32.xlu0 %v229_v1, %s2645_s7  ;;  %v2747_v2 = vld [vmem:[%s2737_s6 + $0x21] sm:$0xff]  ;;  %v2754_v4 = vld [vmem:[%s2737_s6 + $0x39] sm:$0xff] }
  0x1e   : > { %v2757_v5 = vld [vmem:[%s2737_s6 + $0x31] sm:$0xff]  ;;  %v2767_v7 = vld [vmem:[%s2737_s6 + $0x49] sm:$0xff]  ;;  %v237_v9 = vld [vmem:[%s2737_s6 + $0x61] sm:$0xff] }
  0x1f   : > { %v2764_v6 = vld [vmem:[%s2737_s6 + $0x51] sm:$0xff]  ;;  %v238_v8 = vld [vmem:[%s2737_s6 + $0x69] sm:$0xff]  ;;  %v240_v10 = vld [vmem:[%s2737_s6 + $0x81] sm:$0xff] }
  0x20   : > { %v239_v11 = vld [vmem:[%s2737_s6 + $0x79] sm:$0xff]  ;;  %v241_v13 = vld [vmem:[%s2737_s6 + $0x91] sm:$0xff]  ;;  %v2792_v15 = vld [vmem:[%s2737_s6 + $0xa9] sm:$0xff] }
  0x21   : > { %525 = vrot.lane.b32.xlu1 %v2747_v2, %s2645_s7  ;;  %521 = vrot.lane.b32.xlu0 %v230_v3, %s2645_s7  ;;  %v2782_v12 = vld [vmem:[%s2737_s6 + $0x99] sm:$0xff]  ;;  %v2789_v14 = vld [vmem:[%s2737_s6 + $0xb1] sm:$0xff] }
  0x22   : > { %4326 = vst [vmem:[#allocation6_spill] sm:$0xff] %v2782_v12  ;;  %v2799_v16 = vld [vmem:[%s2737_s6 + $0xc9] sm:$0xff]  ;;  %v2802_v17 = vld [vmem:[%s2737_s6 + $0xc1] sm:$0xff]  ;;  %v2812_v19 = vld [vmem:[%s2737_s6 + $0xd9] sm:$0xff] }
  0x23   : > { %v2809_v18 = vld [vmem:[%s2737_s6 + $0xe1] sm:$0xff]  ;;  %v250_v20 = vld [vmem:[%s2737_s6 + $0xf9] sm:$0xff]  ;;  %v249_v21 = vld [vmem:[%s2737_s6 + $0xf1] sm:$0xff] }
  0x24   : > { %v252_v22 = vld [vmem:[%s2737_s6 + $0x111] sm:$0xff]  ;;  %v251_v23 = vld [vmem:[%s2737_s6 + $0x109] sm:$0xff]  ;;  %v253_v25 = vld [vmem:[%s2737_s6 + $0x121] sm:$0xff] }
  0x25   : > { %529 = vrot.lane.b32.xlu1 %v2754_v4, %s2645_s7  ;;  %527 = vrot.lane.b32.xlu0 %v2757_v5, %s2645_s7  ;;  %v254_v24 = vld [vmem:[%s2737_s6 + $0x129] sm:$0xff]  ;;  %v2831_v26 = vld [vmem:[%s2737_s6 + $0x141] sm:$0xff] }
  0x26   : > { %4327 = vst [vmem:[#allocation7_spill] sm:$0xff] %v2831_v26  ;;  %v255_v27 = vld [vmem:[%s2737_s6 + $0x139] sm:$0xff]  ;;  %v2841_v29 = vld [vmem:[%s2737_s6 + $0x151] sm:$0xff]  ;;  %v2851_v31 = vld [vmem:[%s2737_s6 + $0x169] sm:$0xff] }
  0x27   : > { %v2838_v28 = vld [vmem:[%s2737_s6 + $0x159] sm:$0xff]  ;;  %4329 = vst [vmem:[#allocation9_spill] sm:$0xff] %v2841_v29  ;;  %v2848_v30 = vld [vmem:[%s2737_s6 + $0x171] sm:$0xff]  ;;  %v261_v33 = vld [vmem:[%s2737_s6 + $0x2] sm:$0xff] }
  0x28   : > { %4328 = vst [vmem:[#allocation8_spill] sm:$0xff] %v2838_v28  ;;  %v262_v32 = vld [vmem:[%s2737_s6 + $0xa] sm:$0xff]  ;;  %v264_v34 = vld [vmem:[%s2737_s6 + $0x22] sm:$0xff]  ;;  %v263_v35 = vld [vmem:[%s2737_s6 + $0x1a] sm:$0xff] }
  0x29   : > { %533 = vrot.lane.b32.xlu1 %v2764_v6, %s2645_s7  ;;  %531 = vrot.lane.b32.xlu0 %v2767_v7, %s2645_s7  ;;  %v266_v36 = vld [vmem:[%s2737_s6 + $0x3a] sm:$0xff]  ;;  %v265_v37 = vld [vmem:[%s2737_s6 + $0x32] sm:$0xff] }
  0x2a   : > { %v268_v38 = vld [vmem:[%s2737_s6 + $0x52] sm:$0xff]  ;;  %v267_v39 = vld [vmem:[%s2737_s6 + $0x4a] sm:$0xff]  ;;  %v269_v41 = vld [vmem:[%s2737_s6 + $0x62] sm:$0xff] }
  0x2b   : > { %v270_v40 = vld [vmem:[%s2737_s6 + $0x6a] sm:$0xff]  ;;  %v2878_v42 = vld [vmem:[%s2737_s6 + $0x82] sm:$0xff]  ;;  %v271_v43 = vld [vmem:[%s2737_s6 + $0x7a] sm:$0xff] }
  0x2c   : > { %4330 = vst [vmem:[#allocation10_spill] sm:$0xff] %v2878_v42  ;;  %v2885_v44 = vld [vmem:[%s2737_s6 + $0x9a] sm:$0xff]  ;;  %v2888_v45 = vld [vmem:[%s2737_s6 + $0x92] sm:$0xff]  ;;  %v2898_v47 = vld [vmem:[%s2737_s6 + $0xaa] sm:$0xff] }
  0x2d   : > { %537 = vrot.lane.b32.xlu1 %v238_v8, %s2645_s7  ;;  %535 = vrot.lane.b32.xlu0 %v237_v9, %s2645_s7  ;;  %4331 = vst [vmem:[#allocation11_spill] sm:$0xff] %v2885_v44  ;;  %4332 = vst [vmem:[#allocation12_spill] sm:$0xff] %v2888_v45  ;;  %v2895_v46 = vld [vmem:[%s2737_s6 + $0xb2] sm:$0xff]  ;;  %v2905_v48 = vld [vmem:[%s2737_s6 + $0xca] sm:$0xff] }
  0x2e   : > { %4333 = vst [vmem:[#allocation13_spill] sm:$0xff] %v2898_v47  ;;  %v2908_v49 = vld [vmem:[%s2737_s6 + $0xc2] sm:$0xff]  ;;  %v2918_v51 = vld [vmem:[%s2737_s6 + $0xda] sm:$0xff]  ;;  %v281_v53 = vld [vmem:[%s2737_s6 + $0xf2] sm:$0xff] }
  0x2f   : > { %v2915_v50 = vld [vmem:[%s2737_s6 + $0xe2] sm:$0xff]  ;;  %v282_v52 = vld [vmem:[%s2737_s6 + $0xfa] sm:$0xff]  ;;  %v284_v54 = vld [vmem:[%s2737_s6 + $0x112] sm:$0xff] }
  0x30   : > { %v283_v55 = vld [vmem:[%s2737_s6 + $0x10a] sm:$0xff]  ;;  %v285_v57 = vld [vmem:[%s2737_s6 + $0x122] sm:$0xff]  ;;  %v199_v58 = vld [vmem:[%s2737_s6 + $0x18] sm:$0xff] }
  0x31   : > { %541 = vrot.lane.b32.xlu1 %v240_v10, %s2645_s7  ;;  %539 = vrot.lane.b32.xlu0 %v239_v11, %s2645_s7  ;;  %v286_v56 = vld [vmem:[%s2737_s6 + $0x12a] sm:$0xff]  ;;  %v2938_v59 = vld [vmem:[%s2737_s6 + $0x142] sm:$0xff] }
  0x32   : > { %4334 = vst [vmem:[#allocation14_spill] sm:$0xff] %v2938_v59  ;;  %v2941_v60 = vld [vmem:[%s2737_s6 + $0x13a] sm:$0xff]  ;;  %v2957_v8 = vld [vmem:[%s2737_s6 + $0x152] sm:$0xff] }
  0x33   : > { %4335 = vst [vmem:[#allocation15_spill] sm:$0xff] %v2941_v60  ;;  %v200_v1 = vld [vmem:[%s2737_s6 + $0x20] sm:$0xff]  ;;  %4337 = vst [vmem:[#allocation17_spill] sm:$0xff] %v2957_v8 }
  0x34   : > { %v2954_v3 = vld [vmem:[%s2737_s6 + $0x15a] sm:$0xff] }
  0x35   : > { %545 = vrot.lane.b32.xlu1 %v2782_v12, %s2645_s7  ;;  %543 = vrot.lane.b32.xlu0 %v241_v13, %s2645_s7  ;;  %4336 = vst [vmem:[#allocation16_spill] sm:$0xff] %v2954_v3  ;;  %v202_v13 = vld [vmem:[%s2737_s6 + $0x38] sm:$0xff]  ;;  %v198_v12 = vld [vmem:[%s2737_s6 + $0x8] sm:$0xff] }
  0x39   : > { %549 = vrot.lane.b32.xlu1 %v2789_v14, %s2645_s7  ;;  %547 = vrot.lane.b32.xlu0 %v2792_v15, %s2645_s7 }
  0x3d   : > { %553 = vrot.lane.b32.xlu1 %v2799_v16, %s2645_s7  ;;  %551 = vrot.lane.b32.xlu0 %v2802_v17, %s2645_s7 }
  0x41   : > { %557 = vrot.lane.b32.xlu1 %v2809_v18, %s2645_s7  ;;  %555 = vrot.lane.b32.xlu0 %v2812_v19, %s2645_s7 }
  0x45   : > { %561 = vrot.lane.b32.xlu1 %v250_v20, %s2645_s7  ;;  %559 = vrot.lane.b32.xlu0 %v249_v21, %s2645_s7  ;;  %v201_v20 = vld [vmem:[%s2737_s6 + $0x30] sm:$0xff] }
  0x46   : > { %v2971_v21 = vld [vmem:[%s2737_s6 + $0x172] sm:$0xff] }
  0x49   : > { %565 = vrot.lane.b32.xlu1 %v252_v22, %s2645_s7  ;;  %563 = vrot.lane.b32.xlu0 %v251_v23, %s2645_s7  ;;  %v2974_v22 = vld [vmem:[%s2737_s6 + $0x16a] sm:$0xff] }
  0x4d   : > { %569 = vrot.lane.b32.xlu1 %v254_v24, %s2645_s7  ;;  %567 = vrot.lane.b32.xlu0 %v253_v25, %s2645_s7 }
  0x51   : > { %573 = vrot.lane.b32.xlu1 %v2831_v26, %s2645_s7  ;;  %571 = vrot.lane.b32.xlu0 %v255_v27, %s2645_s7 }
  0x55   : > { %577 = vrot.lane.b32.xlu1 %v2838_v28, %s2645_s7  ;;  %575 = vrot.lane.b32.xlu0 %v2841_v29, %s2645_s7 }
  0x59   : > { %581 = vrot.lane.b32.xlu1 %v2848_v30, %s2645_s7  ;;  %579 = vrot.lane.b32.xlu0 %v2851_v31, %s2645_s7 }
  0x5d   : > { %649 = vrot.lane.b32.xlu1 %v262_v32, %s2646_s8  ;;  %647 = vrot.lane.b32.xlu0 %v261_v33, %s2646_s8  ;;  %v204_v32 = vld [vmem:[%s2737_s6 + $0x50] sm:$0xff]  ;;  %v203_v33 = vld [vmem:[%s2737_s6 + $0x48] sm:$0xff] }
  0x61   : > { %653 = vrot.lane.b32.xlu1 %v264_v34, %s2646_s8  ;;  %651 = vrot.lane.b32.xlu0 %v263_v35, %s2646_s8 }
  0x65   : > { %657 = vrot.lane.b32.xlu1 %v266_v36, %s2646_s8  ;;  %655 = vrot.lane.b32.xlu0 %v265_v37, %s2646_s8 }
  0x69   : > { %661 = vrot.lane.b32.xlu1 %v268_v38, %s2646_s8  ;;  %659 = vrot.lane.b32.xlu0 %v267_v39, %s2646_s8  ;;  %v206_v38 = vld [vmem:[%s2737_s6 + $0x68] sm:$0xff]  ;;  %v205_v39 = vld [vmem:[%s2737_s6 + $0x60] sm:$0xff] }
  0x6d   : > { %665 = vrot.lane.b32.xlu1 %v270_v40, %s2646_s8  ;;  %663 = vrot.lane.b32.xlu0 %v269_v41, %s2646_s8 }
  0x71   : > { %669 = vrot.lane.b32.xlu1 %v2878_v42, %s2646_s8  ;;  %667 = vrot.lane.b32.xlu0 %v271_v43, %s2646_s8 }
  0x75   : > { %673 = vrot.lane.b32.xlu1 %v2885_v44, %s2646_s8  ;;  %671 = vrot.lane.b32.xlu0 %v2888_v45, %s2646_s8 }
  0x79   : > { %677 = vrot.lane.b32.xlu1 %v2895_v46, %s2646_s8  ;;  %675 = vrot.lane.b32.xlu0 %v2898_v47, %s2646_s8 }
  0x7d   : > { %681 = vrot.lane.b32.xlu1 %v2905_v48, %s2646_s8  ;;  %679 = vrot.lane.b32.xlu0 %v2908_v49, %s2646_s8 }
  0x81   : > { %685 = vrot.lane.b32.xlu1 %v2915_v50, %s2646_s8  ;;  %683 = vrot.lane.b32.xlu0 %v2918_v51, %s2646_s8 }
  0x85   : > { %689 = vrot.lane.b32.xlu1 %v282_v52, %s2646_s8  ;;  %687 = vrot.lane.b32.xlu0 %v281_v53, %s2646_s8  ;;  %v208_v53 = vld [vmem:[%s2737_s6 + $0x80] sm:$0xff] }
  0x89   : > { %693 = vrot.lane.b32.xlu1 %v284_v54, %s2646_s8  ;;  %691 = vrot.lane.b32.xlu0 %v283_v55, %s2646_s8  ;;  %v207_v54 = vld [vmem:[%s2737_s6 + $0x78] sm:$0xff] }
  0x8d   : > { %697 = vrot.lane.b32.xlu1 %v286_v56, %s2646_s8  ;;  %695 = vrot.lane.b32.xlu0 %v285_v57, %s2646_s8 }
  0x8f   : > { %v524_v61 = vpop.permute.xlu1 %523  ;;  %v2943_v62 = vpop.permute.xlu0 %519 }
  0x90   : > { %v2946_v63 = vsel %vm1511_vm0, %v199_v58, %v524_v61 }
  0x91   : > { %701 = vrot.lane.b32.xlu1 %v2938_v59, %s2646_s8  ;;  %699 = vrot.lane.b32.xlu0 %v2941_v60, %s2646_s8  ;;  %v220_v60 = vld [vmem:[%s2737_s6 + $0x110] sm:$0xff]  ;;  %v3082_v59 = vld [vmem:[%s2737_s6 + $0xd8] sm:$0xff] }
  0x93   : > { %v526_v9 = vpop.permute.xlu1 %525  ;;  %v2959_v10 = vpop.permute.xlu0 %521 }
  0x94   : > { %v2962_v11 = vsel %vm1511_vm0, %v200_v1, %v526_v9 }
  0x95   : > { %705 = vrot.lane.b32.xlu1 %v2954_v3, %s2646_s8  ;;  %703 = vrot.lane.b32.xlu0 %v2957_v8, %s2646_s8  ;;  %v3123_v3 = vld [vmem:[%s2737_s6 + $0x140] sm:$0xff] }
  0x97   : > { %v530_v23 = vpop.permute.xlu1 %529  ;;  %v528_v24 = vpop.permute.xlu0 %527 }
  0x98   : > { %v2977_v25 = vsel %vm1511_vm0, %v202_v13, %v530_v23  ;;  %v2980_v27 = vsel %vm1511_vm0, %v201_v20, %v528_v24  ;;  %v3033_v24 = vld [vmem:[%s2737_s6 + $0x98] sm:$0xff] }
  0x99   : > { %709 = vrot.lane.b32.xlu1 %v2971_v21, %s2646_s8  ;;  %707 = vrot.lane.b32.xlu0 %v2974_v22, %s2646_s8  ;;  %4341 = vst [vmem:[#allocation21_spill] sm:$0xff] %v3033_v24 }
  0x9b   : > { %v534_v34 = vpop.permute.xlu1 %533  ;;  %v532_v35 = vpop.permute.xlu0 %531 }
  0x9c   : > { %v2989_v36 = vsel %vm1511_vm0, %v204_v32, %v534_v34  ;;  %v2992_v37 = vsel %vm1511_vm0, %v203_v33, %v532_v35 }
  0x9d   : > { %777 = vrot.lane.b32.xlu1 %v200_v1, %s2647_s9  ;;  %775 = vrot.lane.b32.xlu0 %v199_v58, %s2647_s9 }
  0x9f   : > { %v538_v40 = vpop.permute.xlu1 %537  ;;  %v536_v41 = vpop.permute.xlu0 %535 }
  0xa0   : > { %v2999_v43 = vsel %vm1511_vm0, %v206_v38, %v538_v40  ;;  %v3002_v52 = vsel %vm1511_vm0, %v205_v39, %v536_v41  ;;  %v218_v41 = vld [vmem:[%s2737_s6 + $0xf8] sm:$0xff] }
  0xa1   : > { %781 = vrot.lane.b32.xlu1 %v202_v13, %s2647_s9  ;;  %779 = vrot.lane.b32.xlu0 %v201_v20, %s2647_s9 }
  0xa3   : > { %v542_v55 = vpop.permute.xlu1 %541  ;;  %v540_v56 = vpop.permute.xlu0 %539 }
  0xa4   : > { %v3009_v57 = vsel %vm1511_vm0, %v208_v53, %v542_v55  ;;  %v3012_v58 = vsel %vm1511_vm0, %v207_v54, %v540_v56  ;;  %v3064_v56 = vld [vmem:[%s2737_s6 + $0xc8] sm:$0xff] }
  0xa5   : > { %785 = vrot.lane.b32.xlu1 %v204_v32, %s2647_s9  ;;  %783 = vrot.lane.b32.xlu0 %v203_v33, %s2647_s9  ;;  %v3036_v32 = vld [vmem:[%s2737_s6 + $0x90] sm:$0xff]  ;;  %v3043_v33 = vld [vmem:[%s2737_s6 + $0xe0] sm:$0xff] }
  0xa7   : > { %v3016_v61 = vpop.permute.xlu1 %545  ;;  %v3018_v1 = vpop.permute.xlu0 %543 }
  0xa8   : > { %4338 = vst [vmem:[#allocation18_spill] sm:$0xff] %v3016_v61  ;;  %v3067_v61 = vld [vmem:[%s2737_s6 + $0xc0] sm:$0xff] }
  0xa9   : > { %789 = vrot.lane.b32.xlu1 %v206_v38, %s2647_s9  ;;  %787 = vrot.lane.b32.xlu0 %v205_v39, %s2647_s9  ;;  %v3048_v38 = vld [vmem:[%s2737_s6 + $0xb0] sm:$0xff]  ;;  %v3051_v39 = vld [vmem:[%s2737_s6 + $0xa8] sm:$0xff] }
  0xaa   : > { %4342 = vst [vmem:[#allocation22_spill] sm:$0xff] %v3048_v38  ;;  %4343 = vst [vmem:[#allocation23_spill] sm:$0xff] %v3051_v39 }
  0xab   : > { %v3022_v9 = vpop.permute.xlu1 %549  ;;  %v3024_v13 = vpop.permute.xlu0 %547 }
  0xac   : > { %4339 = vst [vmem:[#allocation19_spill] sm:$0xff] %v3022_v9  ;;  %4340 = vst [vmem:[#allocation20_spill] sm:$0xff] %v3024_v13  ;;  %v219_v9 = vld [vmem:[%s2737_s6 + $0x108] sm:$0xff] }
  0xad   : > { %793 = vrot.lane.b32.xlu1 %v208_v53, %s2647_s9  ;;  %791 = vrot.lane.b32.xlu0 %v207_v54, %s2647_s9  ;;  %v217_v53 = vld [vmem:[%s2737_s6 + $0xf0] sm:$0xff] }
  0xaf   : > { %v3028_v20 = vpop.permute.xlu1 %553  ;;  %v3030_v23 = vpop.permute.xlu0 %551 }
  0xb1   : > { %797 = vrot.lane.b32.xlu1 %v3033_v24, %s2647_s9  ;;  %795 = vrot.lane.b32.xlu0 %v3036_v32, %s2647_s9 }
  0xb3   : > { %v558_v34 = vpop.permute.xlu1 %557  ;;  %v3045_v35 = vpop.permute.xlu0 %555 }
  0xb4   : > { %v3055_v40 = vsel %vm1511_vm0, %v3043_v33, %v558_v34 }
  0xb5   : > { %801 = vrot.lane.b32.xlu1 %v3048_v38, %s2647_s9  ;;  %799 = vrot.lane.b32.xlu0 %v3051_v39, %s2647_s9  ;;  %v221_v39 = vld [vmem:[%s2737_s6 + $0x120] sm:$0xff] }
  0xb7   : > { %v562_v54 = vpop.permute.xlu1 %561  ;;  %v560_v55 = vpop.permute.xlu0 %559 }
  0xb8   : > { %v3070_v34 = vsel %vm1511_vm0, %v218_v41, %v562_v54  ;;  %v3073_v13 = vsel %vm1511_vm0, %v217_v53, %v560_v55  ;;  %v222_v55 = vld [vmem:[%s2737_s6 + $0x128] sm:$0xff] }
  0xb9   : > { %805 = vrot.lane.b32.xlu1 %v3064_v56, %s2647_s9  ;;  %803 = vrot.lane.b32.xlu0 %v3067_v61, %s2647_s9 }
  0xbb   : > { %v566_v24 = vpop.permute.xlu1 %565  ;;  %v564_v42 = vpop.permute.xlu0 %563 }
  0xbc   : > { %v3085_v26 = vsel %vm1511_vm0, %v220_v60, %v566_v24  ;;  %v3088_v54 = vsel %vm1511_vm0, %v219_v9, %v564_v42 }
  0xbd   : > { %809 = vrot.lane.b32.xlu1 %v3043_v33, %s2647_s9  ;;  %807 = vrot.lane.b32.xlu0 %v3082_v59, %s2647_s9 }
  0xbf   : > { %v570_v45 = vpop.permute.xlu1 %569  ;;  %v568_v8 = vpop.permute.xlu0 %567 }
  0xc0   : > { %v3097_v29 = vsel %vm1511_vm0, %v222_v55, %v570_v45  ;;  %v3100_v24 = vsel %vm1511_vm0, %v221_v39, %v568_v8  ;;  %v197_v8 = vld [vmem:[%s2737_s6] sm:$0xff] }
  0xc1   : > { %813 = vrot.lane.b32.xlu1 %v218_v41, %s2647_s9  ;;  %811 = vrot.lane.b32.xlu0 %v217_v53, %s2647_s9 }
  0xc3   : > { %v3104_v42 = vpop.permute.xlu1 %573  ;;  %v3106_v38 = vpop.permute.xlu0 %571 }
  0xc5   : > { %817 = vrot.lane.b32.xlu1 %v220_v60, %s2647_s9  ;;  %815 = vrot.lane.b32.xlu0 %v219_v9, %s2647_s9  ;;  %v3126_v60 = vld [vmem:[%s2737_s6 + $0x138] sm:$0xff]  ;;  %v1512_v9 = vsel %vm1511_vm0, %v197_v8, %v2943_v62  ;;  %v3156_v8 = vld [vmem:[%s2737_s6 + $0x168] sm:$0xff] }
  0xc7   : > { %v3110_v44 = vpop.permute.xlu1 %577  ;;  %v3112_v45 = vpop.permute.xlu0 %575 }
  0xc8   : > { %4344 = vst [vmem:[#allocation24_spill] sm:$0xff] %v3110_v44  ;;  %4345 = vst [vmem:[#allocation25_spill] sm:$0xff] %v3112_v45  ;;  %v3137_v44 = vld [vmem:[%s2737_s6 + $0x158] sm:$0xff] }
  0xc9   : > { %821 = vrot.lane.b32.xlu1 %v222_v55, %s2647_s9  ;;  %819 = vrot.lane.b32.xlu0 %v221_v39, %s2647_s9  ;;  %v1513_v39 = vsel %vm1511_vm0, %v198_v12, %v2959_v10  ;;  %4348 = vst [vmem:[#allocation28_spill] sm:$0xff] %v3137_v44  ;;  %v3153_v10 = vld [vmem:[%s2737_s6 + $0x170] sm:$0xff] }
  0xcb   : > { %v3117_v41 = vpop.permute.xlu1 %581  ;;  %v3119_v53 = vpop.permute.xlu0 %579 }
  0xcc   : > { %4346 = vst [vmem:[#allocation26_spill] sm:$0xff] %v3117_v41  ;;  %4347 = vst [vmem:[#allocation27_spill] sm:$0xff] %v3119_v53  ;;  %v3140_v53 = vld [vmem:[%s2737_s6 + $0x150] sm:$0xff] }
  0xcd   : > { %825 = vrot.lane.b32.xlu1 %v3123_v3, %s2647_s9  ;;  %823 = vrot.lane.b32.xlu0 %v3126_v60, %s2647_s9  ;;  %4349 = vst [vmem:[#allocation29_spill] sm:$0xff] %v3140_v53 }
  0xcf   : > { %v650_v55 = vpop.permute.xlu1 %649  ;;  %v648_v45 = vpop.permute.xlu0 %647 }
  0xd0   : > { %v3143_v41 = vsel %vm1544_vm1, %v1513_v39, %v650_v55  ;;  %v3146_v28 = vsel %vm1544_vm1, %v1512_v9, %v648_v45  ;;  %v3171_v9 = vld [vmem:[%s2737_s6 + $0x188] sm:$0xff]  ;;  %v3174_v39 = vld [vmem:[%s2737_s6 + $0x180] sm:$0xff] }
  0xd1   : > { %829 = vrot.lane.b32.xlu1 %v3137_v44, %s2647_s9  ;;  %827 = vrot.lane.b32.xlu0 %v3140_v53, %s2647_s9 }
  0xd3   : > { %v654_v12 = vpop.permute.xlu1 %653  ;;  %v652_v62 = vpop.permute.xlu0 %651 }
  0xd4   : > { %v3160_v47 = vsel %vm1544_vm1, %v2962_v11, %v654_v12  ;;  %v3164_v45 = vsel %vm1544_vm1, %v2946_v63, %v652_v62 }
  0xd5   : > { %833 = vrot.lane.b32.xlu1 %v3153_v10, %s2647_s9  ;;  %831 = vrot.lane.b32.xlu0 %v3156_v8, %s2647_s9 }
  0xd7   : > { %v658_v55 = vpop.permute.xlu1 %657  ;;  %v656_v53 = vpop.permute.xlu0 %655 }
  0xd8   : > { %v3178_v11 = vsel %vm1544_vm1, %v2977_v25, %v658_v55  ;;  %v3182_v63 = vsel %vm1544_vm1, %v2980_v27, %v656_v53 }
  0xd9   : > { %837 = vrot.lane.b32.xlu1 %v3171_v9, %s2647_s9  ;;  %835 = vrot.lane.b32.xlu0 %v3174_v39, %s2647_s9 }
  0xdb   : > { %v662_v12 = vpop.permute.xlu1 %661  ;;  %v660_v62 = vpop.permute.xlu0 %659 }
  0xdc   : > { %v3190_v44 = vsel %vm1544_vm1, %v2989_v36, %v662_v12  ;;  %v3194_v25 = vsel %vm1544_vm1, %v2992_v37, %v660_v62  ;;  %v1529_v62 = vsel %vm1511_vm0, %v3064_v56, %v3028_v20  ;;  %v3267_v20 = vld [vmem:[%s2737_s6 + $0x181] sm:$0xff] }
  0xdd   : > { %905 = vrot.lane.b32.xlu1 %v2747_v2, %s2648_s10  ;;  %903 = vrot.lane.b32.xlu0 %v2740_v0, %s2648_s10 }
  0xdf   : > { %v666_v27 = vpop.permute.xlu1 %665  ;;  %v664_v53 = vpop.permute.xlu0 %663 }
  0xe0   : > { %v3202_v55 = vsel %vm1544_vm1, %v2999_v43, %v666_v27  ;;  %v3206_v36 = vsel %vm1544_vm1, %v3002_v52, %v664_v53  ;;  %v1528_v27 = vsel %vm1511_vm0, %v3067_v61, %v3030_v23  ;;  %v1530_v23 = vsel %vm1511_vm0, %v3082_v59, %v3045_v35 }
  0xe1   : > { %909 = vrot.lane.b32.xlu1 %v2754_v4, %s2648_s10  ;;  %907 = vrot.lane.b32.xlu0 %v2757_v5, %s2648_s10  ;;  %v3225_v4 = vld [vmem:[%s2737_s6 + $0x189] sm:$0xff]  ;;  %v1524_v5 = vsel %vm1511_vm0, %v3036_v32, %v3018_v1  ;;  %v2340_v1 = vld [vmem:[%s2737_s6 + $0x1a0] sm:$0xff] }
  0xe3   : > { %v670_v2 = vpop.permute.xlu1 %669  ;;  %v668_v37 = vpop.permute.xlu0 %667 }
  0xe4   : > { %v3214_v0 = vsel %vm1544_vm1, %v3009_v57, %v670_v2  ;;  %v3218_v43 = vsel %vm1544_vm1, %v3012_v58, %v668_v37 }
  0xe5   : > { %913 = vrot.lane.b32.xlu1 %v2764_v6, %s2648_s10  ;;  %911 = vrot.lane.b32.xlu0 %v2767_v7, %s2648_s10  ;;  %v3240_v6 = vld [vmem:[%s2737_s6 + $0x18a] sm:$0xff] }
  0xe7   : > { %v3230_v52 = vpop.permute.xlu1 %673  ;;  %v672_v57 = vpop.permute.xlu0 %671 }
  0xe8   : > { %4350 = vst [vmem:[#allocation30_spill] sm:$0xff] %v3230_v52  ;;  %v3233_v12 = vsel %vm1544_vm1, %v1524_v5, %v672_v57  ;;  %v2372_v57 = vld [vmem:[%s2737_s6 + $0x1a1] sm:$0xff] }
  0xe9   : > { %933 = vrot.lane.b32.xlu1 %v2799_v16, %s2648_s10  ;;  %965 = vrot.lane.b32.xlu0 %v3225_v4, %s2648_s10 }
  0xeb   : > { %v3242_v7 = vpop.permute.xlu1 %677  ;;  %v3244_v58 = vpop.permute.xlu0 %675 }
  0xed   : > { %1061 = vrot.lane.b32.xlu1 %v2905_v48, %s2649_s11  ;;  %1093 = vrot.lane.b32.xlu0 %v3240_v6, %s2649_s11 }
  0xef   : > { %v682_v53 = vpop.permute.xlu1 %681  ;;  %v680_v2 = vpop.permute.xlu0 %679 }
  0xf0   : > { %v3258_v37 = vsel %vm1544_vm1, %v1529_v62, %v682_v53  ;;  %v3261_v5 = vsel %vm1544_vm1, %v1528_v27, %v680_v2 }
  0xf1   : > { %1189 = vrot.lane.b32.xlu1 %v3043_v33, %s2650_s12  ;;  %1221 = vrot.lane.b32.xlu0 %v2340_v1, %s2650_s12  ;;  %v2404_v33 = vld [vmem:[%s2737_s6 + $0x1a2] sm:$0xff] }
  0xf3   : > { %v686_v52 = vpop.permute.xlu1 %685  ;;  %v684_v62 = vpop.permute.xlu0 %683 }
  0xf4   : > { %v3275_v27 = vsel %vm1544_vm1, %v3055_v40, %v686_v52  ;;  %v3278_v53 = vsel %vm1544_vm1, %v1530_v23, %v684_v62  ;;  %v3296_v52 = vld [vmem:[%s2737_s6 + $0x182] sm:$0xff] }
  0xf5   : > { %963 = vrot.lane.b32.xlu1 %v3267_v20, %s2648_s10  ;;  %1349 = vrot.lane.b32.xlu0 %v2372_v57, %s2651_s13 }
  0xf7   : > { %v690_v1 = vpop.permute.xlu1 %689  ;;  %v688_v2 = vpop.permute.xlu0 %687 }
  0xf8   : > { %v3286_v35 = vsel %vm1544_vm1, %v3070_v34, %v690_v1  ;;  %v3290_v40 = vsel %vm1544_vm1, %v3073_v13, %v688_v2  ;;  %v1539_v1 = vsel %vm1511_vm0, %v3123_v3, %v3104_v42 }
  0xf9   : > { %1477 = vrot.lane.b32.xlu1 %v2404_v33, %s2652_s14  ;;  %1317 = vrot.lane.b32.xlu0 %v2809_v18, %s2651_s13 }
  0xfb   : > { %v694_v57 = vpop.permute.xlu1 %693  ;;  %v692_v23 = vpop.permute.xlu0 %691 }
  0xfc   : > { %v3300_v62 = vsel %vm1544_vm1, %v3085_v26, %v694_v57  ;;  %v3304_v34 = vsel %vm1544_vm1, %v3088_v54, %v692_v23  ;;  %v2339_v54 = vld [vmem:[%s2737_s6 + $0x198] sm:$0xff] }
  0xfd   : > { %1091 = vrot.lane.b32.xlu1 %v3296_v52, %s2649_s11  ;;  %931 = vrot.lane.b32.xlu0 %v2802_v17, %s2648_s10 }
  0xff   : > { %v698_v18 = vpop.permute.xlu1 %697  ;;  %v696_v13 = vpop.permute.xlu0 %695 }
 0x100   : > { %v3312_v33 = vsel %vm1544_vm1, %v3097_v29, %v698_v18  ;;  %v3316_v26 = vsel %vm1544_vm1, %v3100_v24, %v696_v13  ;;  %v1538_v29 = vsel %vm1511_vm0, %v3126_v60, %v3106_v38  ;;  %v2403_v38 = vld [vmem:[%s2737_s6 + $0x19a] sm:$0xff] }
 0x101   : > { %1059 = vrot.lane.b32.xlu1 %v2908_v49, %s2649_s11  ;;  %1445 = vrot.lane.b32.xlu0 %v2915_v50, %s2652_s14  ;;  %v2371_v50 = vld [vmem:[%s2737_s6 + $0x199] sm:$0xff] }
 0x103   : > { %v702_v2 = vpop.permute.xlu1 %701  ;;  %v700_v57 = vpop.permute.xlu0 %699 }
 0x104   : > { %v3330_v24 = vsel %vm1544_vm1, %v1539_v1, %v702_v2  ;;  %v3333_v23 = vsel %vm1544_vm1, %v1538_v29, %v700_v57 }
 0x105   : > { %1187 = vrot.lane.b32.xlu1 %v3082_v59, %s2650_s12  ;;  %1219 = vrot.lane.b32.xlu0 %v2339_v54, %s2650_s12 }
 0x107   : > { %v3339_v18 = vpop.permute.xlu1 %705  ;;  %v3341_v42 = vpop.permute.xlu0 %703 }
 0x109   : > { %961 = vrot.lane.b32.xlu1 %v2848_v30, %s2648_s10  ;;  %1347 = vrot.lane.b32.xlu0 %v2371_v50, %s2651_s13 }
 0x10b   : > { %v3347_v13 = vpop.permute.xlu1 %709  ;;  %v3349_v1 = vpop.permute.xlu0 %707 }
 0x10d   : > { %1475 = vrot.lane.b32.xlu1 %v2403_v38, %s2652_s14  ;;  %1315 = vrot.lane.b32.xlu0 %v2812_v19, %s2651_s13 }
 0x10f   : > { %v778_v59 = vpop.permute.xlu1 %777  ;;  %v776_v54 = vpop.permute.xlu0 %775 }
 0x110   : > { %v3356_v29 = vsel %vm1577_vm2, %v3143_v41, %v778_v59  ;;  %v3360_v2 = vsel %vm1577_vm2, %v3146_v28, %v776_v54 }
 0x111   : > { %4351 = vst [vmem:[#allocation31_spill] sm:$0xff] %v3356_v29  ;;  %4352 = vst [vmem:[#allocation32_spill] sm:$0xff] %v3360_v2  ;;  %1089 = vrot.lane.b32.xlu1 %v2971_v21, %s2649_s11  ;;  %929 = vrot.lane.b32.xlu0 %v2789_v14, %s2648_s10 }
 0x113   : > { %v782_v57 = vpop.permute.xlu1 %781  ;;  %v780_v50 = vpop.permute.xlu0 %779 }
 0x114   : > { %v3368_v19 = vsel %vm1577_vm2, %v3160_v47, %v782_v57  ;;  %v3372_v41 = vsel %vm1577_vm2, %v3164_v45, %v780_v50 }
 0x115   : > { %1057 = vrot.lane.b32.xlu1 %v2895_v46, %s2649_s11  ;;  %1443 = vrot.lane.b32.xlu0 %v2918_v51, %s2652_s14 }
 0x117   : > { %v786_v28 = vpop.permute.xlu1 %785  ;;  %v784_v38 = vpop.permute.xlu0 %783 }
 0x118   : > { %v3380_v59 = vsel %vm1577_vm2, %v3178_v11, %v786_v28  ;;  %v3384_v47 = vsel %vm1577_vm2, %v3182_v63, %v784_v38 }
 0x119   : > { %1185 = vrot.lane.b32.xlu1 %v3064_v56, %s2650_s12  ;;  %1217 = vrot.lane.b32.xlu0 %v3171_v9, %s2650_s12 }
 0x11b   : > { %v790_v45 = vpop.permute.xlu1 %789  ;;  %v788_v54 = vpop.permute.xlu0 %787 }
 0x11c   : > { %v3392_v51 = vsel %vm1577_vm2, %v3190_v44, %v790_v45  ;;  %v3396_v11 = vsel %vm1577_vm2, %v3194_v25, %v788_v54 }
 0x11d   : > { %959 = vrot.lane.b32.xlu1 %v2851_v31, %s2648_s10  ;;  %1345 = vrot.lane.b32.xlu0 %v3225_v4, %s2651_s13 }
 0x11f   : > { %v794_v56 = vpop.permute.xlu1 %793  ;;  %v792_v63 = vpop.permute.xlu0 %791 }
 0x120   : > { %v3404_v9 = vsel %vm1577_vm2, %v3202_v55, %v794_v56  ;;  %v3408_v44 = vsel %vm1577_vm2, %v3206_v36, %v792_v63  ;;  %v4356_v56 = vld [vmem:[#allocation16_spill] sm:$0xff] }
 0x121   : > { %1473 = vrot.lane.b32.xlu1 %v3240_v6, %s2652_s14  ;;  %1313 = vrot.lane.b32.xlu0 %v2799_v16, %s2651_s13 }
 0x123   : > { %v798_v25 = vpop.permute.xlu1 %797  ;;  %v796_v57 = vpop.permute.xlu0 %795 }
 0x124   : > { %v3416_v4 = vsel %vm1577_vm2, %v3214_v0, %v798_v25  ;;  %v3420_v55 = vsel %vm1577_vm2, %v3218_v43, %v796_v57  ;;  %v4353_v0 = vld [vmem:[#allocation13_spill] sm:$0xff]  ;;  %v4358_v25 = vld [vmem:[#allocation11_spill] sm:$0xff] }
 0x125   : > { %1087 = vrot.lane.b32.xlu1 %v2974_v22, %s2649_s11  ;;  %927 = vrot.lane.b32.xlu0 %v2792_v15, %s2648_s10 }
 0x127   : > { %v3426_v36 = vpop.permute.xlu1 %801  ;;  %v800_v6 = vpop.permute.xlu0 %799 }
 0x128   : > { %v3430_v16 = vsel %vm1577_vm2, %v3233_v12, %v800_v6 }
 0x129   : > { %1055 = vrot.lane.b32.xlu1 %v4353_v0, %s2649_s11  ;;  %1441 = vrot.lane.b32.xlu0 %v2905_v48, %s2652_s14  ;;  %v4355_v48 = vld [vmem:[#allocation8_spill] sm:$0xff] }
 0x12b   : > { %v3436_v43 = vpop.permute.xlu1 %805  ;;  %v3438_v50 = vpop.permute.xlu0 %803 }
 0x12d   : > { %1183 = vrot.lane.b32.xlu1 %v3067_v61, %s2650_s12  ;;  %1215 = vrot.lane.b32.xlu0 %v3174_v39, %s2650_s12 }
 0x12f   : > { %v810_v15 = vpop.permute.xlu1 %809  ;;  %v808_v28 = vpop.permute.xlu0 %807 }
 0x130   : > { %v3446_v12 = vsel %vm1577_vm2, %v3258_v37, %v810_v15  ;;  %v3450_v38 = vsel %vm1577_vm2, %v3261_v5, %v808_v28 }
 0x131   : > { %4354 = vst [vmem:[#allocation13_spill] sm:$0xff] %v3450_v38  ;;  %957 = vrot.lane.b32.xlu1 %v4355_v48, %s2648_s10  ;;  %1343 = vrot.lane.b32.xlu0 %v3267_v20, %s2651_s13  ;;  %v4360_v48 = vld [vmem:[#allocation9_spill] sm:$0xff]  ;;  %v4368_v38 = vld [vmem:[#allocation26_spill] sm:$0xff] }
 0x132   : > { %v1543_v2 = vsel %vm1511_vm0, %v3153_v10, %v4368_v38 }
 0x133   : > { %v814_v61 = vpop.permute.xlu1 %813  ;;  %v812_v45 = vpop.permute.xlu0 %811 }
 0x134   : > { %v3458_v39 = vsel %vm1577_vm2, %v3275_v27, %v814_v61  ;;  %v3462_v37 = vsel %vm1577_vm2, %v3278_v53, %v812_v45  ;;  %v4357_v53 = vld [vmem:[#allocation6_spill] sm:$0xff] }
 0x135   : > { %1471 = vrot.lane.b32.xlu1 %v3296_v52, %s2652_s14  ;;  %1311 = vrot.lane.b32.xlu0 %v2802_v17, %s2651_s13 }
 0x137   : > { %v818_v5 = vpop.permute.xlu1 %817  ;;  %v816_v54 = vpop.permute.xlu0 %815 }
 0x138   : > { %v3470_v20 = vsel %vm1577_vm2, %v3286_v35, %v818_v5  ;;  %v3474_v27 = vsel %vm1577_vm2, %v3290_v40, %v816_v54  ;;  %v4361_v5 = vld [vmem:[#allocation17_spill] sm:$0xff] }
 0x139   : > { %1085 = vrot.lane.b32.xlu1 %v4356_v56, %s2649_s11  ;;  %925 = vrot.lane.b32.xlu0 %v4357_v53, %s2648_s10 }
 0x13b   : > { %v822_v52 = vpop.permute.xlu1 %821  ;;  %v820_v63 = vpop.permute.xlu0 %819 }
 0x13c   : > { %v3482_v17 = vsel %vm1577_vm2, %v3300_v62, %v822_v52  ;;  %v3486_v35 = vsel %vm1577_vm2, %v3304_v34, %v820_v63  ;;  %v4359_v34 = vld [vmem:[#allocation22_spill] sm:$0xff]  ;;  %v4365_v52 = vld [vmem:[#allocation23_spill] sm:$0xff] }
 0x13d   : > { %1053 = vrot.lane.b32.xlu1 %v4358_v25, %s2649_s11  ;;  %1439 = vrot.lane.b32.xlu0 %v2908_v49, %s2652_s14 }
 0x13f   : > { %v826_v40 = vpop.permute.xlu1 %825  ;;  %v824_v57 = vpop.permute.xlu0 %823 }
 0x140   : > { %v3494_v6 = vsel %vm1577_vm2, %v3312_v33, %v826_v40  ;;  %v3498_v62 = vsel %vm1577_vm2, %v3316_v26, %v824_v57  ;;  %v4366_v40 = vld [vmem:[#allocation7_spill] sm:$0xff] }
 0x141   : > { %1181 = vrot.lane.b32.xlu1 %v4359_v34, %s2650_s12  ;;  %1213 = vrot.lane.b32.xlu0 %v3153_v10, %s2650_s12 }
 0x143   : > { %v830_v15 = vpop.permute.xlu1 %829  ;;  %v828_v28 = vpop.permute.xlu0 %827 }
 0x144   : > { %v3506_v49 = vsel %vm1577_vm2, %v3330_v24, %v830_v15  ;;  %v3510_v33 = vsel %vm1577_vm2, %v3333_v23, %v828_v28  ;;  %v3525_v24 = vld [vmem:[%s2737_s6 + $0x91] sm:$0xff]  ;;  %v3562_v28 = vld [vmem:[%s2737_s6 + $0x81] sm:$0xff] }
 0x145   : > { %955 = vrot.lane.b32.xlu1 %v4360_v48, %s2648_s10  ;;  %1341 = vrot.lane.b32.xlu0 %v2848_v30, %s2651_s13 }
 0x147   : > { %v3516_v26 = vpop.permute.xlu1 %833  ;;  %v3518_v61 = vpop.permute.xlu0 %831 }
 0x149   : > { %1469 = vrot.lane.b32.xlu1 %v2971_v21, %s2652_s14  ;;  %1309 = vrot.lane.b32.xlu0 %v2789_v14, %s2651_s13  ;;  %v4364_v21 = vld [vmem:[#allocation12_spill] sm:$0xff] }
 0x14b   : > { %v838_v23 = vpop.permute.xlu1 %837  ;;  %v3527_v45 = vpop.permute.xlu0 %835 }
 0x14d   : > { %1083 = vrot.lane.b32.xlu1 %v4361_v5, %s2649_s11  ;;  %923 = vrot.lane.b32.xlu0 %v3525_v24, %s2648_s10 }
 0x14f   : > { %v3533_v30 = vpop.permute.xlu1 %905  ;;  %v3535_v54 = vpop.permute.xlu0 %903 }
 0x150   : > { %4362 = vst [vmem:[#allocation8_spill] sm:$0xff] %v3533_v30  ;;  %4363 = vst [vmem:[#allocation16_spill] sm:$0xff] %v3535_v54 }
 0x151   : > { %1051 = vrot.lane.b32.xlu1 %v4364_v21, %s2649_s11  ;;  %1437 = vrot.lane.b32.xlu0 %v2895_v46, %s2652_s14  ;;  %v2351_v46 = vld [vmem:[%s2737_s6 + $0xa9] sm:$0xff]  ;;  %v4367_v21 = vld [vmem:[#allocation14_spill] sm:$0xff] }
 0x153   : > { %v3541_v14 = vpop.permute.xlu1 %909  ;;  %v3543_v53 = vpop.permute.xlu0 %907 }
 0x155   : > { %1179 = vrot.lane.b32.xlu1 %v4365_v52, %s2650_s12  ;;  %1211 = vrot.lane.b32.xlu0 %v3156_v8, %s2650_s12 }
 0x157   : > { %v3549_v63 = vpop.permute.xlu1 %913  ;;  %v3551_v25 = vpop.permute.xlu0 %911 }
 0x159   : > { %953 = vrot.lane.b32.xlu1 %v4366_v40, %s2648_s10  ;;  %1339 = vrot.lane.b32.xlu0 %v2851_v31, %s2651_s13 }
 0x15b   : > { %v934_v57 = vpop.permute.xlu1 %933  ;;  %v966_v15 = vpop.permute.xlu0 %965 }
 0x15d   : > { %1467 = vrot.lane.b32.xlu1 %v2974_v22, %s2652_s14  ;;  %1307 = vrot.lane.b32.xlu0 %v2351_v46, %s2651_s13  ;;  %v4369_v22 = vld [vmem:[#allocation10_spill] sm:$0xff]  ;;  %v1576_v46 = vsel %vm1544_vm1, %v1543_v2, %v3347_v13 }
 0x15e   : > { %v3586_v2 = vld [vmem:[%s2737_s6 + $0x139] sm:$0xff] }
 0x15f   : > { %v1062_v48 = vpop.permute.xlu1 %1061  ;;  %v1094_v5 = vpop.permute.xlu0 %1093 }
 0x161   : > { %1081 = vrot.lane.b32.xlu1 %v4367_v21, %s2649_s11  ;;  %921 = vrot.lane.b32.xlu0 %v3562_v28, %s2648_s10  ;;  %v1609_v21 = vsel %vm1577_vm2, %v1576_v46, %v838_v23  ;;  %v2366_v23 = vld [vmem:[%s2737_s6 + $0x159] sm:$0xff] }
 0x162   : > { %v1642_v10 = vsel %vm1610_vm4, %v1609_v21, %v966_v15  ;;  %v4372_v21 = vld [vmem:[#allocation19_spill] sm:$0xff] }
 0x163   : > { %v1190_v40 = vpop.permute.xlu1 %1189  ;;  %v1222_v31 = vpop.permute.xlu0 %1221  ;;  %v1675_v38 = vsel %vm1643_vm3, %v1642_v10, %v1094_v5  ;;  %v1527_v10 = vsel %vm1511_vm0, %v4359_v34, %v4372_v21 }
 0x164   : > { %v1708_v13 = vsel %vm1676_vm5, %v1675_v38, %v1222_v31  ;;  %v1560_v31 = vsel %vm1544_vm1, %v1527_v10, %v3242_v7 }
 0x165   : > { %1049 = vrot.lane.b32.xlu1 %v4369_v22, %s2649_s11  ;;  %1435 = vrot.lane.b32.xlu0 %v4353_v0, %s2652_s14  ;;  %v4370_v22 = vld [vmem:[#allocation21_spill] sm:$0xff]  ;;  %v4371_v0 = vld [vmem:[#allocation28_spill] sm:$0xff] }
 0x167   : > { %v964_v54 = vpop.permute.xlu1 %963  ;;  %v1350_v29 = vpop.permute.xlu0 %1349 }
 0x168   : > { %v1741_v46 = vsel %vm1709_vm6, %v1708_v13, %v1350_v29  ;;  %v2350_v29 = vld [vmem:[%s2737_s6 + $0x99] sm:$0xff] }
 0x169   : > { %1177 = vrot.lane.b32.xlu1 %v4370_v22, %s2650_s12  ;;  %1209 = vrot.lane.b32.xlu0 %v4371_v0, %s2650_s12 }
 0x16b   : > { %v1478_v30 = vpop.permute.xlu1 %1477  ;;  %v1318_v15 = vpop.permute.xlu0 %1317 }
 0x16c   : > { %v1774_v5 = vsel %vm1742_vm7, %v1741_v46, %v1478_v30  ;;  %v1593_v30 = vsel %vm1577_vm2, %v1560_v31, %v3436_v43  ;;  %v4373_v31 = vld [vmem:[#allocation15_spill] sm:$0xff] }
 0x16d   : > { %951 = vrot.lane.b32.xlu1 %v3586_v2, %s2648_s10  ;;  %1337 = vrot.lane.b32.xlu0 %v2366_v23, %s2651_s13  ;;  %v1626_v34 = vsel %vm1610_vm4, %v1593_v30, %v934_v57  ;;  %v3611_v23 = vld [vmem:[%s2737_s6 + $0x79] sm:$0xff] }
 0x16e   : > { %2451 = vmatprep.subr.msk.mxu0 %vm1831_vm8, %v1774_v5  ;;  %2499 = vmatprep.subr.msk.mxu1 %vm1831_vm8, %v1774_v5  ;;  %v1659_v46 = vsel %vm1643_vm3, %v1626_v34, %v1062_v48  ;;  %v2382_v57 = vld [vmem:[%s2737_s6 + $0x9a] sm:$0xff] }
 0x16f   : > { %v1092_v38 = vpop.permute.xlu1 %1091  ;;  %v932_v13 = vpop.permute.xlu0 %931  ;;  %v1692_v7 = vsel %vm1676_vm5, %v1659_v46, %v1190_v40 }
 0x170   : > { %v1725_v5 = vsel %vm1709_vm6, %v1692_v7, %v1318_v15  ;;  %v4374_v15 = vld [vmem:[#allocation27_spill] sm:$0xff] }
 0x171   : > { %1465 = vrot.lane.b32.xlu1 %v4356_v56, %s2652_s14  ;;  %1305 = vrot.lane.b32.xlu0 %v2350_v29, %s2651_s13  ;;  %v3622_v56 = vld [vmem:[%s2737_s6 + $0x7a] sm:$0xff]  ;;  %v1542_v29 = vsel %vm1511_vm0, %v3156_v8, %v4374_v15 }
 0x172   : > { %v1575_v30 = vsel %vm1544_vm1, %v1542_v29, %v3349_v1  ;;  %v4375_v8 = vld [vmem:[#allocation29_spill] sm:$0xff]  ;;  %v4376_v29 = vld [vmem:[#allocation20_spill] sm:$0xff] }
 0x173   : > { %v1060_v43 = vpop.permute.xlu1 %1059  ;;  %v1446_v21 = vpop.permute.xlu0 %1445  ;;  %v1608_v34 = vsel %vm1577_vm2, %v1575_v30, %v3527_v45  ;;  %v2365_v1 = vld [vmem:[%s2737_s6 + $0x151] sm:$0xff] }
 0x174   : > { %v1758_v10 = vsel %vm1742_vm7, %v1725_v5, %v1446_v21  ;;  %v1641_v5 = vsel %vm1610_vm4, %v1608_v34, %v964_v54 }
 0x175   : > { %1079 = vrot.lane.b32.xlu1 %v4373_v31, %s2649_s11  ;;  %919 = vrot.lane.b32.xlu0 %v3611_v23, %s2648_s10  ;;  %v1674_v21 = vsel %vm1643_vm3, %v1641_v5, %v1092_v38  ;;  %v3643_v31 = vld [vmem:[%s2737_s6 + $0x129] sm:$0xff]  ;;  %v1526_v38 = vsel %vm1511_vm0, %v4365_v52, %v4376_v29 }
 0x176   : > { %2452 = vmatpush3.xpose.msk.msra.mxu0 %vm1831_vm8, %v1758_v10  ;;  %2515 = vmatpush3.xpose.msk.msra.mxu1 %vm1831_vm8, %v1758_v10 }
 0x177   : > { %v1188_v48 = vpop.permute.xlu1 %1187  ;;  %v1220_v40 = vpop.permute.xlu0 %1219 }
 0x178   : > { %v1707_v10 = vsel %vm1676_vm5, %v1674_v21, %v1220_v40  ;;  %v2397_v40 = vld [vmem:[%s2737_s6 + $0x152] sm:$0xff]  ;;  %v3668_v21 = vld [vmem:[%s2737_s6 + $0x12a] sm:$0xff] }
 0x179   : > { %1047 = vrot.lane.b32.xlu1 %v3622_v56, %s2649_s11  ;;  %1433 = vrot.lane.b32.xlu0 %v2382_v57, %s2652_s14 }
 0x17b   : > { %v962_v46 = vpop.permute.xlu1 %961  ;;  %v1348_v7 = vpop.permute.xlu0 %1347 }
 0x17c   : > { %v1740_v45 = vsel %vm1709_vm6, %v1707_v10, %v1348_v7  ;;  %v3671_v10 = vld [vmem:[%s2737_s6 + $0x69] sm:$0xff] }
 0x17d   : > { %1175 = vrot.lane.b32.xlu1 %v3036_v32, %s2650_s12  ;;  %1207 = vrot.lane.b32.xlu0 %v4375_v8, %s2650_s12  ;;  %v1559_v32 = vsel %vm1544_vm1, %v1526_v38, %v3244_v58  ;;  %v2316_v38 = vld [vmem:[%s2737_s6 + $0x80] sm:$0xff] }
 0x17e   : > { %v1592_v30 = vsel %vm1577_vm2, %v1559_v32, %v3438_v50 }
 0x17f   : > { %v1476_v57 = vpop.permute.xlu1 %1475  ;;  %v1316_v15 = vpop.permute.xlu0 %1315  ;;  %v1625_v52 = vsel %vm1610_vm4, %v1592_v30, %v932_v13 }
 0x180   : > { %v1773_v54 = vsel %vm1742_vm7, %v1740_v45, %v1476_v57  ;;  %v1658_v5 = vsel %vm1643_vm3, %v1625_v52, %v1060_v43  ;;  %v2381_v43 = vld [vmem:[%s2737_s6 + $0x92] sm:$0xff] }
 0x181   : > { %949 = vrot.lane.b32.xlu1 %v3643_v31, %s2648_s10  ;;  %1335 = vrot.lane.b32.xlu0 %v2365_v1, %s2651_s13  ;;  %v1691_v58 = vsel %vm1676_vm5, %v1658_v5, %v1188_v48 }
 0x182   : > { %2453 = vmatprep.subr.msk.mxu0 %vm1831_vm8, %v1773_v54  ;;  %2500 = vmatprep.subr.msk.mxu1 %vm1831_vm8, %v1773_v54  ;;  %v1724_v50 = vsel %vm1709_vm6, %v1691_v58, %v1316_v15  ;;  %v4377_v15 = vld [vmem:[#allocation24_spill] sm:$0xff]  ;;  %v3703_v58 = vld [vmem:[%s2737_s6 + $0x121] sm:$0xff] }
 0x183   : > { %v1090_v34 = vpop.permute.xlu1 %1089  ;;  %v930_v7 = vpop.permute.xlu0 %929  ;;  %v1541_v54 = vsel %vm1511_vm0, %v4371_v0, %v4377_v15 }
 0x184   : > { %v1574_v29 = vsel %vm1544_vm1, %v1541_v54, %v3339_v18  ;;  %v2364_v18 = vld [vmem:[%s2737_s6 + $0x141] sm:$0xff] }
 0x185   : > { %1463 = vrot.lane.b32.xlu1 %v2397_v40, %s2652_s14  ;;  %1303 = vrot.lane.b32.xlu0 %v3525_v24, %s2651_s13  ;;  %v3682_v24 = vld [vmem:[%s2737_s6 + $0x6a] sm:$0xff]  ;;  %v1607_v32 = vsel %vm1577_vm2, %v1574_v29, %v3516_v26 }
 0x186   : > { %v1640_v52 = vsel %vm1610_vm4, %v1607_v32, %v962_v46  ;;  %v4378_v46 = vld [vmem:[#allocation18_spill] sm:$0xff] }
 0x187   : > { %v1058_v1 = vpop.permute.xlu1 %1057  ;;  %v1444_v45 = vpop.permute.xlu0 %1443  ;;  %v1673_v5 = vsel %vm1643_vm3, %v1640_v52, %v1090_v34  ;;  %v1525_v34 = vsel %vm1511_vm0, %v4370_v22, %v4378_v46  ;;  %v3731_v52 = vld [vmem:[%s2737_s6 + $0x61] sm:$0xff] }
 0x188   : > { %v1757_v13 = vsel %vm1742_vm7, %v1724_v50, %v1444_v45 }
 0x189   : > { %1077 = vrot.lane.b32.xlu1 %v3668_v21, %s2649_s11  ;;  %917 = vrot.lane.b32.xlu0 %v3671_v10, %s2648_s10 }
 0x18a   : > { %2454 = vmatpush3.xpose.msk.msra.mxu0 %vm1831_vm8, %v1757_v13  ;;  %2516 = vmatpush3.xpose.msk.msra.mxu1 %vm1831_vm8, %v1757_v13 }
 0x18b   : > { %v1186_v48 = vpop.permute.xlu1 %1185  ;;  %v1218_v57 = vpop.permute.xlu0 %1217 }
 0x18c   : > { %v1706_v0 = vsel %vm1676_vm5, %v1673_v5, %v1218_v57  ;;  %v2396_v57 = vld [vmem:[%s2737_s6 + $0x142] sm:$0xff] }
 0x18d   : > { %1045 = vrot.lane.b32.xlu1 %v3682_v24, %s2649_s11  ;;  %1431 = vrot.lane.b32.xlu0 %v2381_v43, %s2652_s14 }
 0x18f   : > { %v960_v40 = vpop.permute.xlu1 %959  ;;  %v1346_v30 = vpop.permute.xlu0 %1345 }
 0x190   : > { %v1739_v50 = vsel %vm1709_vm6, %v1706_v0, %v1346_v30  ;;  %v3728_v30 = vld [vmem:[%s2737_s6 + $0x122] sm:$0xff] }
 0x191   : > { %1173 = vrot.lane.b32.xlu1 %v2316_v38, %s2650_s12  ;;  %1205 = vrot.lane.b32.xlu0 %v3123_v3, %s2650_s12  ;;  %v4379_v3 = vld [vmem:[#allocation30_spill] sm:$0xff] }
 0x192   : > { %v1558_v43 = vsel %vm1544_vm1, %v1525_v34, %v4379_v3 }
 0x193   : > { %v1474_v26 = vpop.permute.xlu1 %1473  ;;  %v1314_v45 = vpop.permute.xlu0 %1313  ;;  %v1591_v15 = vsel %vm1577_vm2, %v1558_v43, %v3426_v36 }
 0x194   : > { %v1772_v13 = vsel %vm1742_vm7, %v1739_v50, %v1474_v26  ;;  %v1624_v22 = vsel %vm1610_vm4, %v1591_v15, %v930_v7  ;;  %v4380_v50 = vld [vmem:[#allocation25_spill] sm:$0xff] }
 0x195   : > { %947 = vrot.lane.b32.xlu1 %v3703_v58, %s2648_s10  ;;  %1333 = vrot.lane.b32.xlu0 %v2364_v18, %s2651_s13  ;;  %v1657_v38 = vsel %vm1643_vm3, %v1624_v22, %v1058_v1  ;;  %v2380_v1 = vld [vmem:[%s2737_s6 + $0x82] sm:$0xff]  ;;  %v1540_v26 = vsel %vm1511_vm0, %v4375_v8, %v4380_v50  ;;  %v3763_v15 = vld [vmem:[%s2737_s6 + $0x111] sm:$0xff] }
 0x196   : > { %2455 = vmatprep.subr.msk.mxu0 %vm1831_vm8, %v1772_v13  ;;  %2501 = vmatprep.subr.msk.mxu1 %vm1831_vm8, %v1772_v13  ;;  %v1690_v32 = vsel %vm1676_vm5, %v1657_v38, %v1186_v48  ;;  %v2315_v13 = vld [vmem:[%s2737_s6 + $0x78] sm:$0xff] }
 0x197   : > { %v1088_v54 = vpop.permute.xlu1 %1087  ;;  %v928_v29 = vpop.permute.xlu0 %927  ;;  %v1723_v36 = vsel %vm1709_vm6, %v1690_v32, %v1314_v45  ;;  %v1573_v45 = vsel %vm1544_vm1, %v1540_v26, %v3341_v42 }
 0x198   : > { %v1606_v46 = vsel %vm1577_vm2, %v1573_v45, %v3518_v61  ;;  %v1623_v32 = vsel %vm1610_vm4, %v3430_v16, %v928_v29  ;;  %v2330_v16 = vld [vmem:[%s2737_s6 + $0x128] sm:$0xff] }
 0x199   : > { %1461 = vrot.lane.b32.xlu1 %v2396_v57, %s2652_s14  ;;  %1301 = vrot.lane.b32.xlu0 %v3562_v28, %s2651_s13  ;;  %v3742_v28 = vld [vmem:[%s2737_s6 + $0x62] sm:$0xff]  ;;  %v1639_v43 = vsel %vm1610_vm4, %v1606_v46, %v960_v40 }
 0x19a   : > { %v1672_v57 = vsel %vm1643_vm3, %v1639_v43, %v1088_v54 }
 0x19b   : > { %v1056_v5 = vpop.permute.xlu1 %1055  ;;  %v1442_v0 = vpop.permute.xlu0 %1441 }
 0x19c   : > { %v1756_v7 = vsel %vm1742_vm7, %v1723_v36, %v1442_v0  ;;  %v1656_v36 = vsel %vm1643_vm3, %v1623_v32, %v1056_v5  ;;  %v3782_v0 = vld [vmem:[%s2737_s6 + $0x112] sm:$0xff] }
 0x19d   : > { %1075 = vrot.lane.b32.xlu1 %v3728_v30, %s2649_s11  ;;  %915 = vrot.lane.b32.xlu0 %v3731_v52, %s2648_s10 }
 0x19e   : > { %2456 = vmatpush3.xpose.msk.msra.mxu0 %vm1831_vm8, %v1756_v7  ;;  %2517 = vmatpush3.xpose.msk.msra.mxu1 %vm1831_vm8, %v1756_v7 }
 0x19f   : > { %v1184_v48 = vpop.permute.xlu1 %1183  ;;  %v1216_v18 = vpop.permute.xlu0 %1215 }
 0x1a0   : > { %v1705_v8 = vsel %vm1676_vm5, %v1672_v57, %v1216_v18 }
 0x1a1   : > { %1043 = vrot.lane.b32.xlu1 %v3742_v28, %s2649_s11  ;;  %1429 = vrot.lane.b32.xlu0 %v2380_v1, %s2652_s14 }
 0x1a3   : > { %v958_v34 = vpop.permute.xlu1 %957  ;;  %v1344_v3 = vpop.permute.xlu0 %1343 }
 0x1a4   : > { %v1738_v42 = vsel %vm1709_vm6, %v1705_v8, %v1344_v3  ;;  %v1638_v45 = vsel %vm1610_vm4, %v3506_v49, %v958_v34  ;;  %v3808_v3 = vld [vmem:[%s2737_s6 + $0x109] sm:$0xff] }
 0x1a5   : > { %1171 = vrot.lane.b32.xlu1 %v2315_v13, %s2650_s12  ;;  %1203 = vrot.lane.b32.xlu0 %v3126_v60, %s2650_s12  ;;  %v2395_v60 = vld [vmem:[%s2737_s6 + $0x13a] sm:$0xff]  ;;  %v3819_v49 = vld [vmem:[%s2737_s6 + $0x10a] sm:$0xff] }
 0x1a7   : > { %v1472_v61 = vpop.permute.xlu1 %1471  ;;  %v1312_v22 = vpop.permute.xlu0 %1311 }
 0x1a8   : > { %v1771_v38 = vsel %vm1742_vm7, %v1738_v42, %v1472_v61 }
 0x1a9   : > { %945 = vrot.lane.b32.xlu1 %v3763_v15, %s2648_s10  ;;  %1331 = vrot.lane.b32.xlu0 %v3586_v2, %s2651_s13  ;;  %v1689_v2 = vsel %vm1676_vm5, %v1656_v36, %v1184_v48  ;;  %v2314_v48 = vld [vmem:[%s2737_s6 + $0x68] sm:$0xff] }
 0x1aa   : > { %2457 = vmatprep.subr.msk.mxu0 %vm1831_vm8, %v1771_v38  ;;  %2502 = vmatprep.subr.msk.mxu1 %vm1831_vm8, %v1771_v38  ;;  %v1722_v7 = vsel %vm1709_vm6, %v1689_v2, %v1312_v22  ;;  %v3830_v38 = vld [vmem:[%s2737_s6 + $0x4a] sm:$0xff] }
 0x1ab   : > { %v1086_v40 = vpop.permute.xlu1 %1085  ;;  %v926_v54 = vpop.permute.xlu0 %925 }
 0x1ac   : > { %v1671_v13 = vsel %vm1643_vm3, %v1638_v45, %v1086_v40  ;;  %v1622_v61 = vsel %vm1610_vm4, %v3416_v4, %v926_v54  ;;  %v2313_v4 = vld [vmem:[%s2737_s6 + $0x60] sm:$0xff] }
 0x1ad   : > { %1459 = vrot.lane.b32.xlu1 %v2395_v60, %s2652_s14  ;;  %1299 = vrot.lane.b32.xlu0 %v3611_v23, %s2651_s13  ;;  %v3794_v23 = vld [vmem:[%s2737_s6 + $0x52] sm:$0xff] }
 0x1af   : > { %v1054_v1 = vpop.permute.xlu1 %1053  ;;  %v1440_v18 = vpop.permute.xlu0 %1439 }
 0x1b0   : > { %v1755_v50 = vsel %vm1742_vm7, %v1722_v7, %v1440_v18  ;;  %v1655_v22 = vsel %vm1643_vm3, %v1622_v61, %v1054_v1  ;;  %v3845_v7 = vld [vmem:[%s2737_s6 + $0xf9] sm:$0xff]  ;;  %v3891_v61 = vld [vmem:[%s2737_s6 + $0xf1] sm:$0xff] }
 0x1b1   : > { %1427 = vrot.lane.b32.xlu1 %v3622_v56, %s2652_s14  ;;  %1073 = vrot.lane.b32.xlu0 %v3782_v0, %s2649_s11 }
 0x1b2   : > { %2458 = vmatpush3.xpose.msk.msra.mxu0 %vm1831_vm8, %v1755_v50  ;;  %2518 = vmatpush3.xpose.msk.msra.mxu1 %vm1831_vm8, %v1755_v50 }
 0x1b3   : > { %v1182_v29 = vpop.permute.xlu1 %1181  ;;  %v1214_v5 = vpop.permute.xlu0 %1213 }
 0x1b4   : > { %v1704_v46 = vsel %vm1676_vm5, %v1671_v13, %v1214_v5 }
 0x1b5   : > { %1201 = vrot.lane.b32.xlu1 %v2330_v16, %s2650_s12  ;;  %1041 = vrot.lane.b32.xlu0 %v3794_v23, %s2649_s11 }
 0x1b7   : > { %v956_v56 = vpop.permute.xlu1 %955  ;;  %v1342_v26 = vpop.permute.xlu0 %1341 }
 0x1b8   : > { %v1737_v43 = vsel %vm1709_vm6, %v1704_v46, %v1342_v26  ;;  %v3876_v46 = vld [vmem:[%s2737_s6 + $0x3a] sm:$0xff] }
 0x1b9   : > { %1329 = vrot.lane.b32.xlu1 %v3643_v31, %s2651_s13  ;;  %1169 = vrot.lane.b32.xlu0 %v2314_v48, %s2650_s12 }
 0x1bb   : > { %v1470_v57 = vpop.permute.xlu1 %1469  ;;  %v1310_v8 = vpop.permute.xlu0 %1309 }
 0x1bc   : > { %v1770_v42 = vsel %vm1742_vm7, %v1737_v43, %v1470_v57 }
 0x1bd   : > { %1297 = vrot.lane.b32.xlu1 %v3671_v10, %s2651_s13  ;;  %943 = vrot.lane.b32.xlu0 %v3808_v3, %s2648_s10  ;;  %v1688_v10 = vsel %vm1676_vm5, %v1655_v22, %v1182_v29 }
 0x1be   : > { %2459 = vmatprep.subr.msk.mxu0 %vm1831_vm8, %v1770_v42  ;;  %2503 = vmatprep.subr.msk.mxu1 %vm1831_vm8, %v1770_v42  ;;  %v1721_v60 = vsel %vm1709_vm6, %v1688_v10, %v1310_v8 }
 0x1bf   : > { %v1084_v31 = vpop.permute.xlu1 %1083  ;;  %v924_v34 = vpop.permute.xlu0 %923 }
 0x1c0   : > { %v1621_v45 = vsel %vm1610_vm4, %v3420_v55, %v924_v34  ;;  %v2344_v34 = vld [vmem:[%s2737_s6 + $0x51] sm:$0xff] }
 0x1c1   : > { %1071 = vrot.lane.b32.xlu1 %v3819_v49, %s2649_s11  ;;  %1457 = vrot.lane.b32.xlu0 %v3668_v21, %s2652_s14  ;;  %v2329_v21 = vld [vmem:[%s2737_s6 + $0x120] sm:$0xff] }
 0x1c3   : > { %v1052_v40 = vpop.permute.xlu1 %1051  ;;  %v1438_v32 = vpop.permute.xlu0 %1437 }
 0x1c4   : > { %v1754_v36 = vsel %vm1742_vm7, %v1721_v60, %v1438_v32  ;;  %v1654_v13 = vsel %vm1643_vm3, %v1621_v45, %v1052_v40  ;;  %v3901_v32 = vld [vmem:[%s2737_s6 + $0xf2] sm:$0xff] }
 0x1c5   : > { %1039 = vrot.lane.b32.xlu1 %v3830_v38, %s2649_s11  ;;  %1425 = vrot.lane.b32.xlu0 %v3682_v24, %s2652_s14  ;;  %v1637_v24 = vsel %vm1610_vm4, %v3510_v33, %v956_v56  ;;  %v3864_v33 = vld [vmem:[%s2737_s6 + $0xfa] sm:$0xff] }
 0x1c6   : > { %2460 = vmatpush3.xpose.msk.msra.mxu0 %vm1831_vm8, %v1754_v36  ;;  %2519 = vmatpush3.xpose.msk.msra.mxu1 %vm1831_vm8, %v1754_v36  ;;  %v1670_v50 = vsel %vm1643_vm3, %v1637_v24, %v1084_v31 }
 0x1c7   : > { %v1180_v54 = vpop.permute.xlu1 %1179  ;;  %v1212_v2 = vpop.permute.xlu0 %1211 }
 0x1c8   : > { %v1703_v16 = vsel %vm1676_vm5, %v1670_v50, %v1212_v2  ;;  %v2311_v50 = vld [vmem:[%s2737_s6 + $0x48] sm:$0xff] }
 0x1c9   : > { %1167 = vrot.lane.b32.xlu1 %v2313_v4, %s2650_s12  ;;  %1199 = vrot.lane.b32.xlu0 %v2329_v21, %s2650_s12 }
 0x1cb   : > { %v954_v1 = vpop.permute.xlu1 %953  ;;  %v1340_v18 = vpop.permute.xlu0 %1339 }
 0x1cc   : > { %v1736_v29 = vsel %vm1709_vm6, %v1703_v16, %v1340_v18  ;;  %v1636_v60 = vsel %vm1610_vm4, %v3494_v6, %v954_v1  ;;  %v3912_v6 = vld [vmem:[%s2737_s6 + $0x32] sm:$0xff]  ;;  %v2327_v16 = vld [vmem:[%s2737_s6 + $0x108] sm:$0xff] }
 0x1cd   : > { %941 = vrot.lane.b32.xlu1 %v3845_v7, %s2648_s10  ;;  %1327 = vrot.lane.b32.xlu0 %v3703_v58, %s2651_s13 }
 0x1cf   : > { %v1468_v5 = vpop.permute.xlu1 %1467  ;;  %v1308_v48 = vpop.permute.xlu0 %1307 }
 0x1d0   : > { %v1769_v26 = vsel %vm1742_vm7, %v1736_v29, %v1468_v5 }
 0x1d1   : > { %1455 = vrot.lane.b32.xlu1 %v3728_v30, %s2652_s14  ;;  %1295 = vrot.lane.b32.xlu0 %v3731_v52, %s2651_s13  ;;  %v1687_v30 = vsel %vm1676_vm5, %v1654_v13, %v1180_v54  ;;  %v2328_v52 = vld [vmem:[%s2737_s6 + $0x110] sm:$0xff] }
 0x1d2   : > { %2461 = vmatprep.subr.msk.mxu0 %vm1831_vm8, %v1769_v26  ;;  %2504 = vmatprep.subr.msk.mxu1 %vm1831_vm8, %v1769_v26  ;;  %v1720_v43 = vsel %vm1709_vm6, %v1687_v30, %v1308_v48 }
 0x1d3   : > { %v1082_v58 = vpop.permute.xlu1 %1081  ;;  %v922_v56 = vpop.permute.xlu0 %921 }
 0x1d4   : > { %v1669_v40 = vsel %vm1643_vm3, %v1636_v60, %v1082_v58  ;;  %v1620_v18 = vsel %vm1610_vm4, %v3404_v9, %v922_v56  ;;  %v2262_v9 = vld [vmem:[%s2737_s6 + $0xe1] sm:$0xff]  ;;  %v2343_v56 = vld [vmem:[%s2737_s6 + $0x49] sm:$0xff] }
 0x1d5   : > { %1423 = vrot.lane.b32.xlu1 %v3742_v28, %s2652_s14  ;;  %1069 = vrot.lane.b32.xlu0 %v3864_v33, %s2649_s11  ;;  %v2312_v28 = vld [vmem:[%s2737_s6 + $0x50] sm:$0xff] }
 0x1d7   : > { %v1050_v57 = vpop.permute.xlu1 %1049  ;;  %v1436_v8 = vpop.permute.xlu0 %1435 }
 0x1d8   : > { %v1753_v55 = vsel %vm1742_vm7, %v1720_v43, %v1436_v8  ;;  %v1653_v24 = vsel %vm1643_vm3, %v1620_v18, %v1050_v57  ;;  %v2294_v57 = vld [vmem:[%s2737_s6 + $0xe2] sm:$0xff] }
 0x1d9   : > { %1197 = vrot.lane.b32.xlu1 %v2328_v52, %s2650_s12  ;;  %1037 = vrot.lane.b32.xlu0 %v3876_v46, %s2649_s11 }
 0x1da   : > { %2462 = vmatpush3.xpose.msk.msra.mxu0 %vm1831_vm8, %v1753_v55  ;;  %2520 = vmatpush3.xpose.msk.msra.mxu1 %vm1831_vm8, %v1753_v55 }
 0x1db   : > { %v1178_v42 = vpop.permute.xlu1 %1177  ;;  %v1210_v31 = vpop.permute.xlu0 %1209 }
 0x1dd   : > { %1325 = vrot.lane.b32.xlu1 %v3763_v15, %s2651_s13  ;;  %1165 = vrot.lane.b32.xlu0 %v2312_v28, %s2650_s12  ;;  %v1702_v15 = vsel %vm1676_vm5, %v1669_v40, %v1210_v31 }
 0x1df   : > { %v952_v22 = vpop.permute.xlu1 %951  ;;  %v1338_v10 = vpop.permute.xlu0 %1337 }
 0x1e0   : > { %v1735_v36 = vsel %vm1709_vm6, %v1702_v15, %v1338_v10  ;;  %v1635_v30 = vsel %vm1610_vm4, %v3498_v62, %v952_v22  ;;  %v2326_v62 = vld [vmem:[%s2737_s6 + $0xf8] sm:$0xff] }
 0x1e1   : > { %1293 = vrot.lane.b32.xlu1 %v2344_v34, %s2651_s13  ;;  %939 = vrot.lane.b32.xlu0 %v3891_v61, %s2648_s10  ;;  %v2310_v10 = vld [vmem:[%s2737_s6 + $0x38] sm:$0xff] }
 0x1e3   : > { %v1466_v4 = vpop.permute.xlu1 %1465  ;;  %v1306_v21 = vpop.permute.xlu0 %1305 }
 0x1e4   : > { %v1768_v54 = vsel %vm1742_vm7, %v1735_v36, %v1466_v4  ;;  %v2261_v4 = vld [vmem:[%s2737_s6 + $0xd9] sm:$0xff] }
 0x1e5   : > { %1067 = vrot.lane.b32.xlu1 %v3901_v32, %s2649_s11  ;;  %1453 = vrot.lane.b32.xlu0 %v3782_v0, %s2652_s14  ;;  %v1686_v0 = vsel %vm1676_vm5, %v1653_v24, %v1178_v42 }
 0x1e6   : > { %2463 = vmatprep.subr.msk.mxu0 %vm1831_vm8, %v1768_v54  ;;  %2505 = vmatprep.subr.msk.mxu1 %vm1831_vm8, %v1768_v54  ;;  %v1719_v29 = vsel %vm1709_vm6, %v1686_v0, %v1306_v21 }
 0x1e7   : > { %v1080_v2 = vpop.permute.xlu1 %1079  ;;  %v920_v1 = vpop.permute.xlu0 %919 }
 0x1e8   : > { %v1668_v52 = vsel %vm1643_vm3, %v1635_v30, %v1080_v2  ;;  %v1619_v34 = vsel %vm1610_vm4, %v3408_v44, %v920_v1  ;;  %v2342_v44 = vld [vmem:[%s2737_s6 + $0x39] sm:$0xff] }
 0x1e9   : > { %1035 = vrot.lane.b32.xlu1 %v3912_v6, %s2649_s11  ;;  %1421 = vrot.lane.b32.xlu0 %v3794_v23, %s2652_s14  ;;  %v2293_v2 = vld [vmem:[%s2737_s6 + $0xda] sm:$0xff] }
 0x1eb   : > { %v1048_v5 = vpop.permute.xlu1 %1047  ;;  %v1434_v48 = vpop.permute.xlu0 %1433 }
 0x1ec   : > { %v1752_v26 = vsel %vm1742_vm7, %v1719_v29, %v1434_v48  ;;  %v1652_v22 = vsel %vm1643_vm3, %v1619_v34, %v1048_v5 }
 0x1ed   : > { %1163 = vrot.lane.b32.xlu1 %v2311_v50, %s2650_s12  ;;  %1195 = vrot.lane.b32.xlu0 %v2327_v16, %s2650_s12  ;;  %v2277_v50 = vld [vmem:[%s2737_s6 + $0x1a] sm:$0xff] }
 0x1ee   : > { %2464 = vmatpush3.xpose.msk.msra.mxu0 %vm1831_vm8, %v1752_v26  ;;  %2521 = vmatpush3.xpose.msk.msra.mxu1 %vm1831_vm8, %v1752_v26  ;;  %v3991_v26 = vld [vmem:[%s4296_s1] sm:$0xff] }
 0x1ef   : > { %v1176_v23 = vpop.permute.xlu1 %1175  ;;  %v1208_v58 = vpop.permute.xlu0 %1207  ;;  %2483 = vmatprep.mubr.msk.f32.mxu0 %vm1831_vm8, %v3991_v26 }
 0x1f0   : > { %v1701_v43 = vsel %vm1676_vm5, %v1668_v52, %v1208_v58 }
 0x1f1   : > { %937 = vrot.lane.b32.xlu1 %v2262_v9, %s2648_s10  ;;  %1323 = vrot.lane.b32.xlu0 %v3808_v3, %s2651_s13  ;;  %v3996_v9 = vld [vmem:[%s4296_s1 + $0x20] sm:$0xff] }
 0x1f2   : > { %2491 = vmatprep.mubr.msk.f32.mxu1 %vm1831_vm8, %v3996_v9 }
 0x1f3   : > { %v950_v45 = vpop.permute.xlu1 %949  ;;  %v1336_v13 = vpop.permute.xlu0 %1335 }
 0x1f4   : > { %v1734_v3 = vsel %vm1709_vm6, %v1701_v43, %v1336_v13  ;;  %v2341_v13 = vld [vmem:[%s2737_s6 + $0x31] sm:$0xff] }
 0x1f5   : > { %1451 = vrot.lane.b32.xlu1 %v3819_v49, %s2652_s14  ;;  %1291 = vrot.lane.b32.xlu0 %v2343_v56, %s2651_s13  ;;  %v2278_v49 = vld [vmem:[%s2737_s6 + $0x22] sm:$0xff] }
 0x1f7   : > { %v1464_v8 = vpop.permute.xlu1 %1463  ;;  %v1304_v55 = vpop.permute.xlu0 %1303 }
 0x1f8   : > { %v1767_v28 = vsel %vm1742_vm7, %v1734_v3, %v1464_v8 }
 0x1f9   : > { %1419 = vrot.lane.b32.xlu1 %v3830_v38, %s2652_s14  ;;  %1065 = vrot.lane.b32.xlu0 %v2294_v57, %s2649_s11  ;;  %v1685_v38 = vsel %vm1676_vm5, %v1652_v22, %v1176_v23 }
 0x1fa   : > { %2465 = vmatprep.subr.msk.mxu0 %vm1831_vm8, %v1767_v28  ;;  %2506 = vmatprep.subr.msk.mxu1 %vm1831_vm8, %v1767_v28  ;;  %v1718_v60 = vsel %vm1709_vm6, %v1685_v38, %v1304_v55  ;;  %v1785_v38 = vld [vmem:[%s4297_s2 + $0x10] sm:$0xff] }
 0x1fb   : > { %v1078_v42 = vpop.permute.xlu1 %1077  ;;  %v918_v31 = vpop.permute.xlu0 %917 }
 0x1fd   : > { %1193 = vrot.lane.b32.xlu1 %v2326_v62, %s2650_s12  ;;  %1033 = vrot.lane.b32.xlu0 %v2278_v49, %s2649_s11  ;;  %v1783_v49 = vld [vmem:[%s4297_s2] sm:$0xff] }
 0x1ff   : > { %v1046_v40 = vpop.permute.xlu1 %1045  ;;  %v1432_v15 = vpop.permute.xlu0 %1431 }
 0x200   : > { %v1751_v36 = vsel %vm1742_vm7, %v1718_v60, %v1432_v15 }
 0x201   : > { %1321 = vrot.lane.b32.xlu1 %v3845_v7, %s2651_s13  ;;  %1161 = vrot.lane.b32.xlu0 %v2310_v10, %s2650_s12  ;;  %v1634_v7 = vsel %vm1610_vm4, %v3482_v17, %v950_v45  ;;  %v2309_v17 = vld [vmem:[%s2737_s6 + $0x30] sm:$0xff]  ;;  %v1786_v10 = vld [vmem:[%s4297_s2 + $0x18] sm:$0xff] }
 0x202   : > { %2466 = vmatpush3.xpose.msk.msra.mxu0 %vm1831_vm8, %v1751_v36  ;;  %2522 = vmatpush3.xpose.msk.msra.mxu1 %vm1831_vm8, %v1751_v36  ;;  %v1667_v24 = vsel %vm1643_vm3, %v1634_v7, %v1078_v42  ;;  %v2653_v42 = vmov 0  }
 0x203   : > { %v1174_v21 = vpop.permute.xlu1 %1173  ;;  %v1206_v54 = vpop.permute.xlu0 %1205  ;;  %2582 = vset.pattern.permute.xlu1 %v2653_v42  ;;  %2581 = vset.pattern.permute.xlu0 %v2653_v42 }
 0x204   : > { %v1700_v0 = vsel %vm1676_vm5, %v1667_v24, %v1206_v54 }
 0x205   : > { %1289 = vrot.lane.b32.xlu1 %v2342_v44, %s2651_s13  ;;  %935 = vrot.lane.b32.xlu0 %v2261_v4, %s2648_s10  ;;  %v1787_v4 = vld [vmem:[%s4297_s2 + $0x20] sm:$0xff] }
 0x207   : > { %v948_v1 = vpop.permute.xlu1 %947  ;;  %v1334_v18 = vpop.permute.xlu0 %1333 }
 0x208   : > { %v1733_v16 = vsel %vm1709_vm6, %v1700_v0, %v1334_v18  ;;  %v1633_v28 = vsel %vm1610_vm4, %v3486_v35, %v948_v1  ;;  %v1789_v1 = vld [vmem:[%s4297_s2 + $0x30] sm:$0xff]  ;;  %v1790_v18 = vld [vmem:[%s4297_s2 + $0x38] sm:$0xff] }
 0x209   : > { %1063 = vrot.lane.b32.xlu1 %v2293_v2, %s2649_s11  ;;  %1449 = vrot.lane.b32.xlu0 %v3864_v33, %s2652_s14  ;;  %v2325_v33 = vld [vmem:[%s2737_s6 + $0xf0] sm:$0xff]  ;;  %s2587_s6 = sshll.u32 %s2654_s5, 4  ;;  %s2588_s6 = int_to_ptr.vmem [resolvable:$false] %s2587_s6 }
 0x20a   : > { %s2589_s7 = scalar_lea.vmem %s2588_s6, 4096 }
 0x20b   : > { %v1462_v29 = vpop.permute.xlu1 %1461  ;;  %v1302_v5 = vpop.permute.xlu0 %1301 }
 0x20c   : > { %v1766_v48 = vsel %vm1742_vm7, %v1733_v16, %v1462_v29 }
 0x20d   : > { %1031 = vrot.lane.b32.xlu1 %v2277_v50, %s2649_s11  ;;  %1417 = vrot.lane.b32.xlu0 %v3876_v46, %s2652_s14  ;;  %v1618_v46 = vsel %vm1610_vm4, %v3392_v51, %v918_v31 }
 0x20e   : > { %2467 = vmatprep.subr.msk.mxu0 %vm1831_vm8, %v1766_v48  ;;  %2507 = vmatprep.subr.msk.mxu1 %vm1831_vm8, %v1766_v48  ;;  %v1651_v56 = vsel %vm1643_vm3, %v1618_v46, %v1046_v40 }
 0x20f   : > { %v1076_v23 = vpop.permute.xlu1 %1075  ;;  %v916_v58 = vpop.permute.xlu0 %915  ;;  %v1684_v45 = vsel %vm1676_vm5, %v1651_v56, %v1174_v21  ;;  %v1788_v21 = vld [vmem:[%s4297_s2 + $0x28] sm:$0xff] }
 0x210   : > { %v1717_v30 = vsel %vm1709_vm6, %v1684_v45, %v1302_v5  ;;  %v1666_v62 = vsel %vm1643_vm3, %v1633_v28, %v1076_v23  ;;  %v1617_v35 = vsel %vm1610_vm4, %v3396_v11, %v916_v58  ;;  %v1616_v23 = vsel %vm1610_vm4, %v3380_v59, %v3549_v63 }
 0x211   : > { %1159 = vrot.lane.b32.xlu1 %v2309_v17, %s2650_s12  ;;  %1191 = vrot.lane.b32.xlu0 %v2325_v33, %s2650_s12 }
 0x213   : > { %v1044_v52 = vpop.permute.xlu1 %1043  ;;  %v1430_v43 = vpop.permute.xlu0 %1429 }
 0x214   : > { %v1750_v57 = vsel %vm1742_vm7, %v1717_v30, %v1430_v43  ;;  %v1650_v60 = vsel %vm1643_vm3, %v1617_v35, %v1044_v52 }
 0x215   : > { %1287 = vrot.lane.b32.xlu1 %v2341_v13, %s2651_s13  ;;  %1319 = vrot.lane.b32.xlu0 %v3891_v61, %s2651_s13  ;;  %v1784_v61 = vld [vmem:[%s4297_s2 + $0x8] sm:$0xff]  ;;  %s2065_s13 = sld [smem:[#allocation2]] }
 0x216   : > { %2468 = vmatpush3.xpose.msk.msra.mxu0 %vm1831_vm8, %v1750_v57  ;;  %2523 = vmatpush3.xpose.msk.msra.mxu1 %vm1831_vm8, %v1750_v57 }
 0x217   : > { %v1172_v51 = vpop.permute.xlu1 %1171  ;;  %v1204_v3 = vpop.permute.xlu0 %1203 }
 0x218   : > { %v1683_v40 = vsel %vm1676_vm5, %v1650_v60, %v1172_v51 }
 0x219   : > { %1415 = vrot.lane.b32.xlu1 %v3912_v6, %s2652_s14  ;;  %1447 = vrot.lane.b32.xlu0 %v3901_v32, %s2652_s14  ;;  %v1699_v6 = vsel %vm1676_vm5, %v1666_v62, %v1204_v3  ;;  %v1615_v62 = vsel %vm1610_vm4, %v3384_v47, %v3551_v25  ;;  %s189_s14 = sand.u32 1, %s2635_s18  }
 0x21a   : > { %s2211_s15 = sshll.u32 %s189_s14, 7  ;;  %s4254_s29 = scalar_lea.sflag [#allocation4], %s189_s14 }
 0x21b   : > { %v946_v8 = vpop.permute.xlu1 %945  ;;  %v1332_v55 = vpop.permute.xlu0 %1331  ;;  %s4207_s16 = scalar_lea.vmem [#allocation3], %s2211_s15 }
 0x21c   : > { %v1732_v32 = vsel %vm1709_vm6, %v1699_v6, %v1332_v55  ;;  %v1632_v16 = vsel %vm1610_vm4, %v3470_v20, %v946_v8  ;;  %s2145_s23 = sshll.u32 %s4207_s16, 4  ;;  %s4248_s23 = int_to_ptr.vmem [resolvable:$true] %s2145_s23 }
 0x21d   : > { %1798 = vperm.xlu1 %2582, %v1784_v61   ;;  %1793 = vperm.xlu0 %2581, %v1783_v49   ;;  %s2583_s30 = scalar_lea.vmem %s4248_s23, 2048  ;;  %p2590_p0 = scmp.lt.s32.totalorder %s4248_s23, %s2588_s6 }
 0x21e   : > { %p2584_p11 = scmp.ne.s32.totalorder %s4248_s23, %s2583_s30  ;;  %p2591_p1 = scmp.lt.s32.totalorder %s2589_s7, %s2583_s30 }
 0x21f   : > { %v1460_v31 = vpop.permute.xlu1 %1459  ;;  %v1300_v34 = vpop.permute.xlu0 %1299 }
 0x220   : > { %v1765_v22 = vsel %vm1742_vm7, %v1732_v32, %v1460_v31  ;;  %v1716_v11 = vsel %vm1709_vm6, %v1683_v40, %v1300_v34  ;;  %p2585_p12 = pnand %p2584_p11, %p2722_p5  ;;  %p2592_p2 = por %p2591_p1, %p2590_p0 }
 0x221   : > { %2469 = vmatprep.subr.msk.mxu0 %vm1831_vm8, %v1765_v22  ;;  %2508 = vmatprep.subr.msk.mxu1 %vm1831_vm8, %v1765_v22 }
 0x222   : > { %1803 = vperm.xlu1 %2582, %v1785_v38   ;;  %1808 = vperm.xlu0 %2581, %v1786_v10   ;;  %p2586_p13 = pneg %p2585_p12 }
 0x223   : > { %v1428_v15 = vpop.permute.xlu1 %1427  ;;  %v1074_v36 = vpop.permute.xlu0 %1073 }
 0x224   : > { %v1749_v44 = vsel %vm1742_vm7, %v1716_v11, %v1428_v15  ;;  %v1665_v29 = vsel %vm1643_vm3, %v1632_v16, %v1074_v36  ;;  %p2593_p3 = pnand %p2592_p2, %p2586_p13 }
 0x225   : > { %2470 = vmatpush3.xpose.msk.msra.mxu0 %vm1831_vm8, %v1749_v44  ;;  %2524 = vmatpush3.xpose.msk.msra.mxu1 %vm1831_vm8, %v1749_v44  ;;  %v1614_v44 = vsel %vm1610_vm4, %v3368_v19, %v3541_v14 }
 0x226   : > { %1813 = vperm.xlu1 %2582, %v1787_v4   ;;  %1818 = vperm.xlu0 %2581, %v1788_v21  }
 0x227   : > { %v1202_v54 = vpop.permute.xlu1 %1201  ;;  %v1042_v2 = vpop.permute.xlu0 %1041 }
 0x228   : > { %v1698_v5 = vsel %vm1676_vm5, %v1665_v29, %v1202_v54  ;;  %v1649_v46 = vsel %vm1643_vm3, %v1616_v23, %v1042_v2 }
 0x22a   : > { %1823 = vperm.xlu1 %2582, %v1789_v1   ;;  %1828 = vperm.xlu0 %2581, %v1790_v18  }
 0x22b   : > { %v1330_v7 = vpop.permute.xlu1 %1329  ;;  %v1170_v24 = vpop.permute.xlu0 %1169 }
 0x22c   : > { %v1731_v48 = vsel %vm1709_vm6, %v1698_v5, %v1330_v7  ;;  %v1682_v20 = vsel %vm1676_vm5, %v1649_v46, %v1170_v24 }
 0x22f   : > { %v1298_v0 = vpop.permute.xlu1 %1297  ;;  %v944_v50 = vpop.permute.xlu0 %943 }
 0x230   : > { %v1715_v56 = vsel %vm1709_vm6, %v1682_v20, %v1298_v0  ;;  %v1631_v57 = vsel %vm1610_vm4, %v3474_v27, %v944_v50 }
 0x233   : > { %v1072_v17 = vpop.permute.xlu1 %1071  ;;  %v1458_v33 = vpop.permute.xlu0 %1457 }
 0x234   : > { %v1764_v58 = vsel %vm1742_vm7, %v1731_v48, %v1458_v33  ;;  %v1664_v51 = vsel %vm1643_vm3, %v1631_v57, %v1072_v17  ;;  %v1613_v17 = vsel %vm1610_vm4, %v3372_v41, %v3543_v53 }
 0x235   : > { %2471 = vmatprep.subr.msk.mxu0 %vm1831_vm8, %v1764_v58  ;;  %2509 = vmatprep.subr.msk.mxu1 %vm1831_vm8, %v1764_v58 }
 0x237   : > { %v1040_v45 = vpop.permute.xlu1 %1039  ;;  %v1426_v13 = vpop.permute.xlu0 %1425 }
 0x238   : > { %v1748_v30 = vsel %vm1742_vm7, %v1715_v56, %v1426_v13  ;;  %v1648_v49 = vsel %vm1643_vm3, %v1615_v62, %v1040_v45 }
 0x239   : > { %2472 = vmatpush3.xpose.msk.msra.mxu0 %vm1831_vm8, %v1748_v30  ;;  %2525 = vmatpush3.xpose.msk.msra.mxu1 %vm1831_vm8, %v1748_v30 }
 0x23b   : > { %v1168_v59 = vpop.permute.xlu1 %1167  ;;  %v1200_v63 = vpop.permute.xlu0 %1199 }
 0x23c   : > { %v1697_v3 = vsel %vm1676_vm5, %v1664_v51, %v1200_v63  ;;  %v1681_v27 = vsel %vm1676_vm5, %v1648_v49, %v1168_v59 }
 0x23f   : > { %v942_v52 = vpop.permute.xlu1 %941  ;;  %v1328_v43 = vpop.permute.xlu0 %1327 }
 0x240   : > { %v1730_v8 = vsel %vm1709_vm6, %v1697_v3, %v1328_v43  ;;  %v1630_v10 = vsel %vm1610_vm4, %v3458_v39, %v942_v52 }
 0x243   : > { %v1456_v55 = vpop.permute.xlu1 %1455  ;;  %v1296_v28 = vpop.permute.xlu0 %1295 }
 0x244   : > { %v1763_v61 = vsel %vm1742_vm7, %v1730_v8, %v1456_v55  ;;  %v1714_v6 = vsel %vm1709_vm6, %v1681_v27, %v1296_v28  ;;  %v4381_v8 = vld [vmem:[#allocation8_spill] sm:$0xff]  ;;  %v4382_v55 = vld [vmem:[#allocation31_spill] sm:$0xff] }
 0x245   : > { %2473 = vmatprep.subr.msk.mxu0 %vm1831_vm8, %v1763_v61  ;;  %2510 = vmatprep.subr.msk.mxu1 %vm1831_vm8, %v1763_v61  ;;  %v1612_v28 = vsel %vm1610_vm4, %v4382_v55, %v4381_v8 }
 0x247   : > { %v1424_v42 = vpop.permute.xlu1 %1423  ;;  %v1070_v32 = vpop.permute.xlu0 %1069 }
 0x248   : > { %v1747_v31 = vsel %vm1742_vm7, %v1714_v6, %v1424_v42  ;;  %v1663_v60 = vsel %vm1643_vm3, %v1630_v10, %v1070_v32 }
 0x249   : > { %2474 = vmatpush3.xpose.msk.msra.mxu0 %vm1831_vm8, %v1747_v31  ;;  %2526 = vmatpush3.xpose.msk.msra.mxu1 %vm1831_vm8, %v1747_v31 }
 0x24b   : > { %v1198_v47 = vpop.permute.xlu1 %1197  ;;  %v1038_v25 = vpop.permute.xlu0 %1037 }
 0x24c   : > { %v1696_v40 = vsel %vm1676_vm5, %v1663_v60, %v1198_v47  ;;  %v1647_v21 = vsel %vm1643_vm3, %v1614_v44, %v1038_v25 }
 0x24f   : > { %v1326_v34 = vpop.permute.xlu1 %1325  ;;  %v1166_v35 = vpop.permute.xlu0 %1165 }
 0x250   : > { %v1729_v11 = vsel %vm1709_vm6, %v1696_v40, %v1326_v34  ;;  %v1680_v39 = vsel %vm1676_vm5, %v1647_v21, %v1166_v35  ;;  %v4383_v34 = vld [vmem:[#allocation16_spill] sm:$0xff] }
 0x251   : > { %v4384_v35 = vld [vmem:[#allocation32_spill] sm:$0xff] }
 0x253   : > { %v1294_v22 = vpop.permute.xlu1 %1293  ;;  %v940_v38 = vpop.permute.xlu0 %939 }
 0x254   : > { %v1713_v54 = vsel %vm1709_vm6, %v1680_v39, %v1294_v22  ;;  %v1629_v0 = vsel %vm1610_vm4, %v3462_v37, %v940_v38  ;;  %v1611_v22 = vsel %vm1610_vm4, %v4384_v35, %v4383_v34  ;;  %v4385_v38 = vld [vmem:[#allocation13_spill] sm:$0xff] }
 0x257   : > { %v1068_v15 = vpop.permute.xlu1 %1067  ;;  %v1454_v36 = vpop.permute.xlu0 %1453 }
 0x258   : > { %v1762_v4 = vsel %vm1742_vm7, %v1729_v11, %v1454_v36  ;;  %v1662_v50 = vsel %vm1643_vm3, %v1629_v0, %v1068_v15 }
 0x259   : > { %2475 = vmatprep.subr.msk.mxu0 %vm1831_vm8, %v1762_v4  ;;  %2511 = vmatprep.subr.msk.mxu1 %vm1831_vm8, %v1762_v4 }
 0x25b   : > { %v1036_v2 = vpop.permute.xlu1 %1035  ;;  %v1422_v1 = vpop.permute.xlu0 %1421 }
 0x25c   : > { %v1746_v18 = vsel %vm1742_vm7, %v1713_v54, %v1422_v1  ;;  %v1646_v23 = vsel %vm1643_vm3, %v1613_v17, %v1036_v2  ;;  %v1776_v2 = vld [vmem:[%s4296_s1 + $0x8] sm:$0xff] }
 0x25d   : > { %2476 = vmatpush3.xpose.msk.msra.mxu0 %vm1831_vm8, %v1746_v18  ;;  %2527 = vmatpush3.xpose.msk.msra.mxu1 %vm1831_vm8, %v1746_v18  ;;  %v1780_v1 = vld [vmem:[%s4296_s1 + $0x28] sm:$0xff]  ;;  %v1777_v18 = vld [vmem:[%s4296_s1 + $0x10] sm:$0xff] }
 0x25f   : > { %v1164_v19 = vpop.permute.xlu1 %1163  ;;  %v1196_v14 = vpop.permute.xlu0 %1195 }
 0x260   : > { %v1695_v16 = vsel %vm1676_vm5, %v1662_v50, %v1196_v14  ;;  %v1679_v37 = vsel %vm1676_vm5, %v1646_v23, %v1164_v19  ;;  %v1781_v19 = vld [vmem:[%s4296_s1 + $0x30] sm:$0xff] }
 0x263   : > { %v938_v7 = vpop.permute.xlu1 %937  ;;  %v1324_v24 = vpop.permute.xlu0 %1323 }
 0x264   : > { %v1728_v29 = vsel %vm1709_vm6, %v1695_v16, %v1324_v24  ;;  %v1628_v63 = vsel %vm1610_vm4, %v3446_v12, %v938_v7 }
 0x267   : > { %v1452_v5 = vpop.permute.xlu1 %1451  ;;  %v1292_v48 = vpop.permute.xlu0 %1291 }
 0x268   : > { %v1761_v33 = vsel %vm1742_vm7, %v1728_v29, %v1452_v5  ;;  %v1712_v58 = vsel %vm1709_vm6, %v1679_v37, %v1292_v48  ;;  %v4203_v29 = vstv %s2065_s13 }
 0x269   : > { %2477 = vmatprep.subr.msk.mxu0 %vm1831_vm8, %v1761_v33  ;;  %2512 = vmatprep.subr.msk.mxu1 %vm1831_vm8, %v1761_v33 }
 0x26b   : > { %v1420_v46 = vpop.permute.xlu1 %1419  ;;  %v1066_v20 = vpop.permute.xlu0 %1065 }
 0x26c   : > { %v1745_v56 = vsel %vm1742_vm7, %v1712_v58, %v1420_v46  ;;  %v1661_v52 = vsel %vm1643_vm3, %v1628_v63, %v1066_v20 }
 0x26d   : > { %2478 = vmatpush3.xpose.msk.msra.mxu0 %vm1831_vm8, %v1745_v56  ;;  %2528 = vmatpush3.xpose.msk.msra.mxu1 %vm1831_vm8, %v1745_v56 }
 0x26f   : > { %v1194_v41 = vpop.permute.xlu1 %1193  ;;  %v1034_v53 = vpop.permute.xlu0 %1033 }
 0x270   : > { %v1694_v43 = vsel %vm1676_vm5, %v1661_v52, %v1194_v41  ;;  %v1645_v61 = vsel %vm1643_vm3, %v1612_v28, %v1034_v53 }
 0x273   : > { %v1322_v45 = vpop.permute.xlu1 %1321  ;;  %v1162_v13 = vpop.permute.xlu0 %1161 }
 0x274   : > { %v1727_v57 = vsel %vm1709_vm6, %v1694_v43, %v1322_v45  ;;  %v1678_v12 = vsel %vm1676_vm5, %v1645_v61, %v1162_v13 }
 0x277   : > { %v1290_v30 = vpop.permute.xlu1 %1289  ;;  %v936_v59 = vpop.permute.xlu0 %935 }
 0x278   : > { %v1711_v49 = vsel %vm1709_vm6, %v1678_v12, %v1290_v30  ;;  %v1627_v10 = vsel %vm1610_vm4, %v4385_v38, %v936_v59 }
 0x27b   : > { %v1064_v51 = vpop.permute.xlu1 %1063  ;;  %v1450_v3 = vpop.permute.xlu0 %1449 }
 0x27c   : > { %v1760_v62 = vsel %vm1742_vm7, %v1727_v57, %v1450_v3  ;;  %v1660_v60 = vsel %vm1643_vm3, %v1627_v10, %v1064_v51 }
 0x27d   : > { %2479 = vmatprep.subr.msk.mxu0 %vm1831_vm8, %v1760_v62  ;;  %2513 = vmatprep.subr.msk.mxu1 %vm1831_vm8, %v1760_v62 }
 0x27f   : > { %v1032_v27 = vpop.permute.xlu1 %1031  ;;  %v1418_v6 = vpop.permute.xlu0 %1417 }
 0x280   : > { %v1744_v42 = vsel %vm1742_vm7, %v1711_v49, %v1418_v6  ;;  %v1644_v40 = vsel %vm1643_vm3, %v1611_v22, %v1032_v27 }
 0x281   : > { %2480 = vmatpush3.xpose.msk.msra.mxu0 %vm1831_vm8, %v1744_v42  ;;  %2529 = vmatpush3.xpose.msk.msra.mxu1 %vm1831_vm8, %v1744_v42 }
 0x283   : > { %v1160_v32 = vpop.permute.xlu1 %1159  ;;  %v1192_v31 = vpop.permute.xlu0 %1191 }
 0x284   : > { %v1677_v11 = vsel %vm1676_vm5, %v1644_v40, %v1160_v32  ;;  %v1693_v15 = vsel %vm1676_vm5, %v1660_v60, %v1192_v31 }
 0x287   : > { %v1288_v47 = vpop.permute.xlu1 %1287  ;;  %v1320_v25 = vpop.permute.xlu0 %1319 }
 0x288   : > { %v1710_v36 = vsel %vm1709_vm6, %v1677_v11, %v1288_v47  ;;  %v1726_v44 = vsel %vm1709_vm6, %v1693_v15, %v1320_v25 }
 0x28b   : > { %v1416_v4 = vpop.permute.xlu1 %1415  ;;  %v1448_v21 = vpop.permute.xlu0 %1447 }
 0x28c   : > { %v1743_v39 = vsel %vm1742_vm7, %v1710_v36, %v1416_v4  ;;  %v1759_v54 = vsel %vm1742_vm7, %v1726_v44, %v1448_v21 }
 0x28d   : > { %2481 = vmatprep.subr.msk.mxu0 %vm1831_vm8, %v1759_v54  ;;  %2514 = vmatprep.subr.msk.mxu1 %vm1831_vm8, %v1759_v54 }
 0x28e   : > { %2482 = vmatpush3.xpose.msk.msra.mxu0 %vm1831_vm8, %v1743_v39  ;;  %2530 = vmatpush3.xpose.msk.msra.mxu1 %vm1831_vm8, %v1743_v39 }
 0x291   : > { %2484 = vmatmul.mubr.msk.f32.vlgmr.msra.gmra.mxu0 %vm1831_vm8, %v3991_v26  ;;  %2492 = vmatmul.mubr.msk.f32.vlgmr.msra.gmra.mxu1 %vm1831_vm8, %v3996_v9  ;;  %v1778_v26 = vld [vmem:[%s4296_s1 + $0x18] sm:$0xff] }
 0x292   : > { %2485 = vmatprep.mubr.msk.f32.mxu0 %vm1831_vm8, %v1776_v2  ;;  %2493 = vmatprep.mubr.msk.f32.mxu1 %vm1831_vm8, %v1780_v1  ;;  %v1782_v9 = vld [vmem:[%s4296_s1 + $0x38] sm:$0xff] }
 0x295   : > { %2486 = vmatmul.mubr.msk.f32.gmra.mxu0 %vm1831_vm8, %v1776_v2  ;;  %2494 = vmatmul.mubr.msk.f32.gmra.mxu1 %vm1831_vm8, %v1780_v1 }
 0x296   : > { %2487 = vmatprep.mubr.msk.f32.mxu0 %vm1831_vm8, %v1777_v18  ;;  %2495 = vmatprep.mubr.msk.f32.mxu1 %vm1831_vm8, %v1781_v19 }
 0x298   : > { %v1799_v14 = vpop.permute.xlu1 %1798  ;;  %v1794_v7 = vpop.permute.xlu0 %1793 }
 0x299   : > { %2488 = vmatmul.mubr.msk.f32.gmra.mxu0 %vm1831_vm8, %v1777_v18  ;;  %2496 = vmatmul.mubr.msk.f32.gmra.mxu1 %vm1831_vm8, %v1781_v19 }
 0x29a   : > { %2489 = vmatprep.mubr.msk.f32.mxu0 %vm1831_vm8, %v1778_v26  ;;  %2497 = vmatprep.mubr.msk.f32.mxu1 %vm1831_vm8, %v1782_v9 }
 0x29d   : > { %2490 = vmatmul.mubr.msk.f32.gmra.mxu0 %vm1831_vm8, %v1778_v26  ;;  %2498 = vmatmul.mubr.msk.f32.gmra.mxu1 %vm1831_vm8, %v1782_v9  ;;  %v4196_v24 = vpop.permute.xlu1 %1803  ;;  %v4198_v0 = vpop.permute.xlu0 %1808 }
 0x2a1   : > { %v1814_v50 = vpop.permute.xlu1 %1813  ;;  %v1819_v37 = vpop.permute.xlu0 %1818 }
 0x2a5   : > { %v1824_v51 = vpop.permute.xlu1 %1823  ;;  %v1829_v35 = vpop.permute.xlu0 %1828 }
 0x351   : > { %v2018_v16 = vpop.f32.mrf.mxu0  ;;  %v2042_v5 = vpop.f32.mrf.mxu1 }
 0x352   : > { %v2019_v48 = vadd.f32 %v2018_v16, %v1794_v7  ;;  %v2043_v17 = vadd.f32 %v2042_v5, %v1814_v50 }
 0x353   : > { %v2020_v33 = vpop.f32.mrf.mxu0  ;;  %v2044_v23 = vpop.f32.mrf.mxu1 }
 0x354   : > { %vm2066_vm9 = vcmp.ge.f32.partialorder %v2019_v48, 0.0  ;;  %v2083_v58 = vmul.f32 %v4203_v29, %v2019_v48  ;;  %vm2074_vm10 = vcmp.ge.f32.partialorder %v2043_v17, 0.0  ;;  %v2091_v46 = vmul.f32 %v4203_v29, %v2043_v17 }
 0x355   : > { %v2021_v20 = vadd.f32 %v2020_v33, %v1794_v7  ;;  %v2045_v56 = vadd.f32 %v2044_v23, %v1814_v50  ;;  %v2024_v41 = vpop.f32.mrf.mxu0  ;;  %v2048_v53 = vpop.f32.mrf.mxu1 }
 0x356   : > { %v2099_v45 = vsel %vm2066_vm9, %v2019_v48, %v2083_v58  ;;  %v2107_v13 = vsel %vm2074_vm10, %v2043_v17, %v2091_v46  ;;  %v2025_v30 = vadd.f32 %v2024_v41, %v1799_v14  ;;  %v2049_v59 = vadd.f32 %v2048_v53, %v1819_v37 }
 0x357   : > { %2115 = vst [vmem:[%s4207_s16] sm:$0xff] %v2099_v45  ;;  %2123 = vst [vmem:[%s4207_s16 + $0x40] sm:$0xff] %v2107_v13  ;;  %vm2067_vm11 = vcmp.ge.f32.partialorder %v2021_v20, 0.0  ;;  %v2084_v63 = vmul.f32 %v4203_v29, %v2021_v20  ;;  %vm2075_vm12 = vcmp.ge.f32.partialorder %v2045_v56, 0.0  ;;  %v2092_v52 = vmul.f32 %v4203_v29, %v2045_v56  ;;  %v2026_v43 = vpop.f32.mrf.mxu0  ;;  %v2050_v57 = vpop.f32.mrf.mxu1 }
 0x358   : > { %vm2068_vm13 = vcmp.ge.f32.partialorder %v2025_v30, 0.0  ;;  %v2085_v3 = vmul.f32 %v4203_v29, %v2025_v30  ;;  %vm2076_vm14 = vcmp.ge.f32.partialorder %v2049_v59, 0.0  ;;  %v2093_v8 = vmul.f32 %v4203_v29, %v2049_v59 }
 0x359   : > { %v2100_v55 = vsel %vm2067_vm11, %v2021_v20, %v2084_v63  ;;  %v2108_v28 = vsel %vm2075_vm12, %v2045_v56, %v2092_v52  ;;  %v2027_v62 = vadd.f32 %v2026_v43, %v1799_v14  ;;  %v2051_v61 = vadd.f32 %v2050_v57, %v1819_v37  ;;  %v2030_v12 = vpop.f32.mrf.mxu0  ;;  %v2054_v49 = vpop.f32.mrf.mxu1 }
 0x35a   : > { %2116 = vst [vmem:[%s4207_s16 + $0x8] sm:$0xff] %v2100_v55  ;;  %2124 = vst [vmem:[%s4207_s16 + $0x48] sm:$0xff] %v2108_v28  ;;  %v2101_v27 = vsel %vm2068_vm13, %v2025_v30, %v2085_v3  ;;  %v2109_v6 = vsel %vm2076_vm14, %v2049_v59, %v2093_v8  ;;  %v2031_v42 = vadd.f32 %v2030_v12, %v4196_v24 }
 0x35b   : > { %v2055_v32 = vadd.f32 %v2054_v49, %v1824_v51  ;;  %2117 = vst [vmem:[%s4207_s16 + $0x10] sm:$0xff] %v2101_v27  ;;  %2125 = vst [vmem:[%s4207_s16 + $0x50] sm:$0xff] %v2109_v6  ;;  %vm2069_vm15 = vcmp.ge.f32.partialorder %v2027_v62, 0.0  ;;  %v2086_v31 = vmul.f32 %v4203_v29, %v2027_v62  ;;  %vm2077_vm0 = vcmp.ge.f32.partialorder %v2051_v61, 0.0  ;;  %v2032_v25 = vpop.f32.mrf.mxu0  ;;  %v2056_v34 = vpop.f32.mrf.mxu1 }
 0x35c   : > { %v2094_v47 = vmul.f32 %v4203_v29, %v2051_v61  ;;  %vm2070_vm1 = vcmp.ge.f32.partialorder %v2031_v42, 0.0  ;;  %v2087_v22 = vmul.f32 %v4203_v29, %v2031_v42  ;;  %v2033_v40 = vadd.f32 %v2032_v25, %v4196_v24 }
 0x35d   : > { %vm2078_vm2 = vcmp.ge.f32.partialorder %v2055_v32, 0.0  ;;  %v2095_v38 = vmul.f32 %v4203_v29, %v2055_v32  ;;  %v2102_v10 = vsel %vm2069_vm15, %v2027_v62, %v2086_v31  ;;  %v2057_v11 = vadd.f32 %v2056_v34, %v1824_v51  ;;  %v2036_v15 = vpop.f32.mrf.mxu0  ;;  %v2060_v36 = vpop.f32.mrf.mxu1 }
 0x35e   : > { %v2110_v60 = vsel %vm2077_vm0, %v2051_v61, %v2094_v47  ;;  %2118 = vst [vmem:[%s4207_s16 + $0x18] sm:$0xff] %v2102_v10  ;;  %v2103_v44 = vsel %vm2070_vm1, %v2031_v42, %v2087_v22  ;;  %v2037_v21 = vadd.f32 %v2036_v15, %v4198_v0  ;;  %v2061_v39 = vadd.f32 %v2060_v36, %v1829_v35 }
 0x35f   : > { %2126 = vst [vmem:[%s4207_s16 + $0x58] sm:$0xff] %v2110_v60  ;;  %v2111_v4 = vsel %vm2078_vm2, %v2055_v32, %v2095_v38  ;;  %2119 = vst [vmem:[%s4207_s16 + $0x20] sm:$0xff] %v2103_v44  ;;  %vm2071_vm3 = vcmp.ge.f32.partialorder %v2033_v40, 0.0  ;;  %v2088_v54 = vmul.f32 %v4203_v29, %v2033_v40  ;;  %vm2079_vm4 = vcmp.ge.f32.partialorder %v2057_v11, 0.0  ;;  %v2038_v1 = vpop.f32.mrf.mxu0  ;;  %v2062_v18 = vpop.f32.mrf.mxu1 }
 0x360   : > { %2127 = vst [vmem:[%s4207_s16 + $0x60] sm:$0xff] %v2111_v4  ;;  %v2096_v2 = vmul.f32 %v4203_v29, %v2057_v11  ;;  %vm2072_vm5 = vcmp.ge.f32.partialorder %v2037_v21, 0.0  ;;  %v2089_v19 = vmul.f32 %v4203_v29, %v2037_v21  ;;  %vm2080_vm6 = vcmp.ge.f32.partialorder %v2061_v39, 0.0 }
 0x361   : > { %v2097_v26 = vmul.f32 %v4203_v29, %v2061_v39  ;;  %v2104_v9 = vsel %vm2071_vm3, %v2033_v40, %v2088_v54  ;;  %v2039_v7 = vadd.f32 %v2038_v1, %v4198_v0  ;;  %v2063_v24 = vadd.f32 %v2062_v18, %v1829_v35 }
 0x362   : > { %v2112_v14 = vsel %vm2079_vm4, %v2057_v11, %v2096_v2  ;;  %2120 = vst [vmem:[%s4207_s16 + $0x28] sm:$0xff] %v2104_v9  ;;  %v2105_v50 = vsel %vm2072_vm5, %v2037_v21, %v2089_v19 }
 0x363   : > { %2128 = vst [vmem:[%s4207_s16 + $0x68] sm:$0xff] %v2112_v14  ;;  %v2113_v16 = vsel %vm2080_vm6, %v2061_v39, %v2097_v26  ;;  %2121 = vst [vmem:[%s4207_s16 + $0x30] sm:$0xff] %v2105_v50  ;;  %vm2073_vm7 = vcmp.ge.f32.partialorder %v2039_v7, 0.0  ;;  %v2090_v5 = vmul.f32 %v4203_v29, %v2039_v7  ;;  %vm2081_vm8 = vcmp.ge.f32.partialorder %v2063_v24, 0.0 }
 0x364   : > { %2129 = vst [vmem:[%s4207_s16 + $0x70] sm:$0xff] %v2113_v16  ;;  %v2098_v48 = vmul.f32 %v4203_v29, %v2063_v24 }
 0x365   : > { %v2106_v0 = vsel %vm2073_vm7, %v2039_v7, %v2090_v5 }
 0x366   : > { %v2114_v17 = vsel %vm2081_vm8, %v2063_v24, %v2098_v48  ;;  %2122 = vst [vmem:[%s4207_s16 + $0x38] sm:$0xff] %v2106_v0 }
 0x367   : > { %2130 = vst [vmem:[%s4207_s16 + $0x78] sm:$0xff] %v2114_v17 }
 0x368   : > { %2596 = shalt.err (!%p2593_p3)
}
 0x369   : > { %s2597_s8 = scalar_lea.hbm %s4246_s28, 2048  ;;  %s2601_s12 = scalar_lea.hbm %s4299_s4, 4096 }
 0x36a   : > { %p2598_p4 = scmp.ne.s32.totalorder %s4246_s28, %s2597_s8  ;;  %p2602_p9 = scmp.lt.s32.totalorder %s4246_s28, %s4299_s4 }
 0x36b   : > { %p2603_p10 = scmp.lt.s32.totalorder %s2601_s12, %s2597_s8 }
 0x36c   : > { %p2599_p7 = pnand %p2598_p4, %p2722_p5 }
 0x36d   : > { %p2604_p11 = por %p2603_p10, %p2602_p9 }
 0x36e   : > { %p2600_p8 = pneg %p2599_p7 }
 0x370   : > { %p2605_p12 = pnand %p2604_p11, %p2600_p8 }
 0x372   : > { %2608 = shalt.err (!%p2605_p12)
}
 0x373   : > { %s2655_s15 = smov 256  }
 0x374   : > { %2532 = dma.vmem_to_hbm [thread:$0]  (%p2722_p5), %s4248_s23, 2048, %s4246_s28, %s4254_s29, %s2655_s15, %s2655_s15, %s2648_s10  }
 0x375 PF: > { %p2538_p13 = scmp.ge.s32.totalorder %s2643_s20, 2  ;;  %s2160_s16 = sand.u32 1, %s2631_s17  }
 0x376   : > { %s2161_s21 = scalar_lea.sflag [#allocation4], %s2160_s16 }
 0x377   : > { %p2535_p0 = pnand %p2538_p13, %p2726_p6 }
 0x379   : > { %p2536_p1 = pneg %p2535_p0 }
 0x37b   : > { %2626 = dma.done.wait (%p2536_p1), %s2161_s21, 2048  }
 0x37c   : > { %2628 = vsyncadd (%p2536_p1), %s2161_s21, 4294965248  ;;  %p15_p2 = scmp.ge.s32.totalorder %s2709_s22, 4   ;;  %s4386_s17 = smov %s2635_s18 }
 0x37d   : > { %s4387_s18 = smov %s2639_s19  ;;  %s4388_s19 = smov %s2720_s25 }
 0x37e   : > { %s4389_s20 = smov %s2709_s22  ;;  %17 = sbr.rel (!%p15_p2) target bundleno = 5 (0x5), region = 73 }
 0x383   :  { %2166 = vsyncpa [#allocation4], 1 }
 0x384   :  { %2168 = vsyncpa [#allocation4 + $0x1], 1 }

</bundles_post_ra>
